<compile_context>
chip_gen: v6e
topology: v6e:2x2x1
jax: 0.10.0
libtpu: 0.0.40
codegen_flags: <defaults>
</compile_context>

<pallas_src>
import functools

import jax
import jax.numpy as jnp
from jax.experimental import pallas as pl
from jax.experimental.pallas import tpu as pltpu


def _round_up(v: int, m: int) -> int:
    return ((v + m - 1) // m) * m


# ----------------------------------------------------------------------------
# Fully fused DRBs kernel:
#   for each stage s:  conv1x1 -> [dilated residual layer] * L -> conv1x1
# The F-channel activation never leaves VMEM; the inter-stage (C_out, T)
# activation never leaves vregs/VMEM either.
# ----------------------------------------------------------------------------
def _drbs_fused_kernel(x_ref, w_in0_ref, b_in0_ref, w_inr_ref, b_inr_ref,
                       wd_ref, bd_ref, w1_ref, b1_ref, w_out_ref, b_out_ref,
                       o_ref, act_ref, *,
                       dilations, layer_offsets, t_valid, c0):
    """Processes one batch element (grid=(N,)); all stages unrolled.

    act_ref: (F_p, T_buf) VMEM scratch.  Columns [c0, c0+T) hold the current
    activation; the halo columns on both sides stay zero and provide the
    "same" padding of the dilated convs.
    """
    T = t_valid
    F_p, T_buf = act_ref.shape
    S = len(dilations)
    f32 = jnp.float32

    # Zero ONLY the halo columns.  Re-done every grid step; must NOT be gated
    # on pl.program_id (each TensorCore has its own scratch instance).
    act_ref[:, 0:c0] = jnp.zeros((F_p, c0), f32)
    act_ref[:, c0 + T:T_buf] = jnp.zeros((F_p, T_buf - c0 - T), f32)

    y = x_ref[0]                                            # (Ci_p, T)
    for s in range(S):
        if s == 0:
            w_in, b_in = w_in0_ref[...], b_in0_ref[...]     # (F_p, Ci_p)
        else:
            w_in, b_in = w_inr_ref[s - 1], b_inr_ref[s - 1]  # (F_p, Co_p)

        # Input 1x1 conv of this stage -> centre of the resident slab.
        act_ref[:, c0:c0 + T] = (
            jnp.dot(w_in, y, preferred_element_type=f32) + b_in)

        # Dilated residual layers (static dilations -> fully unrolled).
        for l, d in enumerate(dilations[s]):
            idx = layer_offsets[s] + l
            xc = act_ref[:, c0:c0 + T]                 # x[t]
            xm = act_ref[:, c0 - d:c0 - d + T]         # x[t - d] (zero padded)
            xp = act_ref[:, c0 + d:c0 + d + T]         # x[t + d] (zero padded)
            h = (jnp.dot(wd_ref[idx, 0], xm, preferred_element_type=f32)
                 + jnp.dot(wd_ref[idx, 1], xc, preferred_element_type=f32)
                 + jnp.dot(wd_ref[idx, 2], xp, preferred_element_type=f32)
                 + bd_ref[idx])
            h = jnp.maximum(h, 0.0)                    # bias + ReLU
            res = jnp.dot(w1_ref[idx], h, preferred_element_type=f32) + b1_ref[idx]
            act_ref[:, c0:c0 + T] = xc + res           # residual add

        # Output 1x1 conv of this stage; feeds the next stage directly from
        # VMEM/vregs (no HBM hop) and is written to this stage's output slice.
        y = (jnp.dot(w_out_ref[s], act_ref[:, c0:c0 + T],
                     preferred_element_type=f32) + b_out_ref[s])   # (Co_p, T)
        o_ref[s, 0] = y.astype(o_ref.dtype)


# ----------------------------------------------------------------------------
# Wrapper: ONE pallas_call for the whole DRBs chain
# ----------------------------------------------------------------------------
def drbs_forward(stage_params, x):
    """Fused DRBs forward.

    x: (N, C_in, T) float32  ->  (num_stages, N, C_out, T) float32
    """
    N, C_in, T = x.shape
    S = len(stage_params)
    assert S >= 1
    f32 = jnp.float32

    F = stage_params[0]["conv_1x1_w"].shape[0]
    C_out = stage_params[0]["conv_out_w"].shape[0]
    for si, sp in enumerate(stage_params):
        assert sp["conv_1x1_w"].shape[0] == F
        assert sp["conv_out_w"].shape == (C_out, F)
        if si > 0:
            assert sp["conv_1x1_w"].shape[1] == C_out
        assert len(sp["layers"]) >= 1

    dilations = tuple(tuple(int(lp["dilation"]) for lp in sp["layers"])
                      for sp in stage_params)
    layer_offsets, off = [], 0
    for ds in dilations:
        layer_offsets.append(off)
        off += len(ds)
    total_layers = off
    halo = max(max(ds) for ds in dilations)

    # Sublane-align channel counts; lane-align the resident activation slab.
    F_p = _round_up(F, 8)
    Ci_p = _round_up(C_in, 8)
    Co_p = _round_up(C_out, 8)
    c0 = _round_up(max(halo, 1), 128)             # left halo, lane aligned
    T_buf = _round_up(c0 + T + halo, 128)         # right halo >= max dilation

    def pad2(w, r, c):
        return jnp.pad(w.astype(f32), ((0, r - w.shape[0]), (0, c - w.shape[1])))

    def padb(b, r):
        return jnp.pad(b.astype(f32), (0, r - b.shape[0])).reshape(r, 1)

    # Stage-0 input conv (C_in may differ from C_out).
    w_in0 = pad2(stage_params[0]["conv_1x1_w"], F_p, Ci_p)      # (F_p, Ci_p)
    b_in0 = padb(stage_params[0]["conv_1x1_b"], F_p)            # (F_p, 1)
    # Input convs of stages 1..S-1 (consume the previous stage's (Co_p, T)).
    if S > 1:
        w_inr = jnp.stack([pad2(sp["conv_1x1_w"], F_p, Co_p)
                           for sp in stage_params[1:]])          # (S-1, F_p, Co_p)
        b_inr = jnp.stack([padb(sp["conv_1x1_b"], F_p)
                           for sp in stage_params[1:]])          # (S-1, F_p, 1)
    else:  # dummy, never read
        w_inr = jnp.zeros((1, F_p, Co_p), f32)
        b_inr = jnp.zeros((1, F_p, 1), f32)
    S_r = w_inr.shape[0]

    # All dilated residual layers of all stages, flattened in stage order.
    wd_all = jnp.stack([
        jnp.stack([pad2(lp["wd"][:, :, k], F_p, F_p) for k in range(3)])
        for sp in stage_params for lp in sp["layers"]])          # (SL, 3, F_p, F_p)
    bd_all = jnp.stack([padb(lp["bd"], F_p)
                        for sp in stage_params for lp in sp["layers"]])  # (SL, F_p, 1)
    w1_all = jnp.stack([pad2(lp["w1"], F_p, F_p)
                        for sp in stage_params for lp in sp["layers"]])  # (SL, F_p, F_p)
    b1_all = jnp.stack([padb(lp["b1"], F_p)
                        for sp in stage_params for lp in sp["layers"]])  # (SL, F_p, 1)
    w_out_all = jnp.stack([pad2(sp["conv_out_w"], Co_p, F_p)
                           for sp in stage_params])              # (S, Co_p, F_p)
    b_out_all = jnp.stack([padb(sp["conv_out_b"], Co_p)
                           for sp in stage_params])              # (S, Co_p, 1)

    x_p = jnp.pad(x.astype(f32), ((0, 0), (0, Ci_p - C_in), (0, 0)))

    SL = total_layers
    # VMEM budget: double-buffered in/out blocks + weights + resident slab
    # + in-kernel temporaries; capped at 48 MiB (v7x TC has only 64 MiB).
    weight_elems = (F_p * Ci_p + F_p + S_r * (F_p * Co_p + F_p)
                    + SL * (3 * F_p * F_p + F_p + F_p * F_p + F_p)
                    + S * (Co_p * F_p + Co_p))
    est_vmem = 4 * (2 * Ci_p * T + 2 * S * Co_p * T + 2 * weight_elems
                    + F_p * T_buf + 8 * F_p * T)
    vmem_limit = int(min(max(2 * est_vmem, 16 * 2 ** 20), 48 * 2 ** 20))

    kern = functools.partial(_drbs_fused_kernel, dilations=dilations,
                             layer_offsets=tuple(layer_offsets),
                             t_valid=T, c0=c0)

    out_p = pl.pallas_call(
        kern,
        out_shape=jax.ShapeDtypeStruct((S, N, Co_p, T), f32),
        grid=(N,),
        in_specs=[
            pl.BlockSpec((1, Ci_p, T), lambda n: (n, 0, 0)),
            pl.BlockSpec((F_p, Ci_p), lambda n: (0, 0)),
            pl.BlockSpec((F_p, 1), lambda n: (0, 0)),
            pl.BlockSpec((S_r, F_p, Co_p), lambda n: (0, 0, 0)),
            pl.BlockSpec((S_r, F_p, 1), lambda n: (0, 0, 0)),
            pl.BlockSpec((SL, 3, F_p, F_p), lambda n: (0, 0, 0, 0)),
            pl.BlockSpec((SL, F_p, 1), lambda n: (0, 0, 0)),
            pl.BlockSpec((SL, F_p, F_p), lambda n: (0, 0, 0)),
            pl.BlockSpec((SL, F_p, 1), lambda n: (0, 0, 0)),
            pl.BlockSpec((S, Co_p, F_p), lambda n: (0, 0, 0)),
            pl.BlockSpec((S, Co_p, 1), lambda n: (0, 0, 0)),
        ],
        out_specs=pl.BlockSpec((S, 1, Co_p, T), lambda n: (0, n, 0, 0)),
        scratch_shapes=[pltpu.VMEM((F_p, T_buf), f32)],
        compiler_params=pltpu.CompilerParams(
            dimension_semantics=("parallel",),
            vmem_limit_bytes=vmem_limit,
        ),
    )(x_p, w_in0, b_in0, w_inr, b_inr, wd_all, bd_all, w1_all, b1_all,
      w_out_all, b_out_all)

    # Single slice of the padded channel axis, once, at the very end.
    return out_p[:, :, :C_out, :]


def drb_forward(params, x):
    """Single-stage DRB forward (convenience): (N, C_in, T) -> (N, C_out, T)."""
    return drbs_forward([params], x)[0]


# ----------------------------------------------------------------------------
# Parameter init (matches PyTorch DRB / DRBs structure)
# ----------------------------------------------------------------------------
def init_drb_params(key, num_layers, num_f_maps, in_channels, out_channels):
    keys = jax.random.split(key, 4 + 4 * num_layers)
    scale = 0.1
    params = {
        "conv_1x1_w": scale * jax.random.normal(keys[0], (num_f_maps, in_channels), jnp.float32),
        "conv_1x1_b": scale * jax.random.normal(keys[1], (num_f_maps,), jnp.float32),
        "conv_out_w": scale * jax.random.normal(keys[2], (out_channels, num_f_maps), jnp.float32),
        "conv_out_b": scale * jax.random.normal(keys[3], (out_channels,), jnp.float32),
        "layers": [],
    }
    for i in range(num_layers):
        k0, k1, k2, k3 = keys[4 + 4 * i: 8 + 4 * i]
        params["layers"].append({
            "dilation": 2 ** i,
            "wd": scale * jax.random.normal(k0, (num_f_maps, num_f_maps, 3), jnp.float32),
            "bd": scale * jax.random.normal(k1, (num_f_maps,), jnp.float32),
            "w1": scale * jax.random.normal(k2, (num_f_maps, num_f_maps), jnp.float32),
            "b1": scale * jax.random.normal(k3, (num_f_maps,), jnp.float32),
        })
    return params


def init_drbs_params(key, num_stages, num_layers, num_f_maps, in_channels, out_channels):
    keys = jax.random.split(key, num_stages)
    stages = [init_drb_params(keys[0], num_layers, num_f_maps, in_channels, out_channels)]
    for s in range(1, num_stages):
        stages.append(init_drb_params(keys[s], num_layers, num_f_maps, out_channels, out_channels))
    return stages


# ----------------------------------------------------------------------------
# Pure-JAX reference (sanity check of the Pallas kernel)
# ----------------------------------------------------------------------------
def _drb_reference(params, x):
    hp = jax.lax.Precision.HIGHEST

    def c1x1(x, w, b):
        return jnp.einsum("oc,nct->not", w, x, precision=hp) + b[None, :, None]

    out = c1x1(x, params["conv_1x1_w"], params["conv_1x1_b"])
    for lp in params["layers"]:
        d = lp["dilation"]
        T = out.shape[-1]
        xp = jnp.pad(out, ((0, 0), (0, 0), (d, d)))
        h = (
            jnp.einsum("oc,nct->not", lp["wd"][:, :, 0], xp[:, :, 0:T], precision=hp)
            + jnp.einsum("oc,nct->not", lp["wd"][:, :, 1], xp[:, :, d:d + T], precision=hp)
            + jnp.einsum("oc,nct->not", lp["wd"][:, :, 2], xp[:, :, 2 * d:2 * d + T], precision=hp)
            + lp["bd"][None, :, None]
        )
        h = jnp.maximum(h, 0.0)
        out = out + c1x1(h, lp["w1"], lp["b1"])
    return c1x1(out, params["conv_out_w"], params["conv_out_b"])


def _drbs_reference(stage_params, x):
    out = _drb_reference(stage_params[0], x)
    outs = [out]
    for sp in stage_params[1:]:
        out = _drb_reference(sp, out)
        outs.append(out)
    return jnp.stack(outs, axis=0)


if __name__ == "__main__":
    key = jax.random.PRNGKey(0)
    k_param, k_x = jax.random.split(key)

    # fastVCC defaults: num_stages=3, num_layers=3 (dilations 1,2,4),
    # num_f_maps=5, in_channels = out_channels = len_frames = 3.
    # T is the flattened LCN spatial output, e.g. 128x128 frame -> 16*16 = 256
    # (a multiple of 128 so the centre writes / output stores are lane-dense).
    num_stages, num_layers, num_f_maps = 3, 3, 5
    in_channels = out_channels = 3
    N, T = 2, 256

    stage_params = init_drbs_params(k_param, num_stages, num_layers, num_f_maps,
                                    in_channels, out_channels)
    x = jax.random.normal(k_x, (N, in_channels, T), jnp.float32)

    fwd = jax.jit(lambda inp: drbs_forward(stage_params, inp))
    y = jax.block_until_ready(fwd(x))

    y_ref = _drbs_reference(stage_params, x)
    assert y.shape == (num_stages, N, out_channels, T)
    max_err = float(jnp.max(jnp.abs(y - y_ref)))
    assert jnp.allclose(y, y_ref, atol=1e-3, rtol=1e-3), max_err

    print("KERNEL_OK")
</pallas_src>

<mosaic_0001>
module attributes {stable_mosaic.version = 11 : i64} {
  func.func @_drbs_fused_kernel(%arg0: i32, %arg1: memref<1x8x256xf32, #tpu.memory_space<vmem>>, %arg2: memref<8x8xf32, #tpu.memory_space<vmem>>, %arg3: memref<8x1xf32, #tpu.memory_space<vmem>>, %arg4: memref<2x8x8xf32, #tpu.memory_space<vmem>>, %arg5: memref<2x8x1xf32, #tpu.memory_space<vmem>>, %arg6: memref<9x3x8x8xf32, #tpu.memory_space<vmem>>, %arg7: memref<9x8x1xf32, #tpu.memory_space<vmem>>, %arg8: memref<9x8x8xf32, #tpu.memory_space<vmem>>, %arg9: memref<9x8x1xf32, #tpu.memory_space<vmem>>, %arg10: memref<3x8x8xf32, #tpu.memory_space<vmem>>, %arg11: memref<3x8x1xf32, #tpu.memory_space<vmem>>, %arg12: memref<3x1x8x256xf32, #tpu.memory_space<vmem>>, %arg13: memref<8x512xf32, #tpu.memory_space<vmem>>) attributes {dimension_semantics = [#tpu.dimension_semantics<parallel>], iteration_bounds = array<i64: 2>, scalar_prefetch = 0 : i64, scratch_operands = 1 : i64, tpu.core_type = #tpu.core_type<tc>, window_params = [{transform_indices = @transform_0, window_bounds = array<i64: 1, 8, 256>}, {pipeline_mode = #tpu.pipeline_mode<synchronous>, transform_indices = @transform_1, window_bounds = array<i64: 8, 8>}, {pipeline_mode = #tpu.pipeline_mode<synchronous>, transform_indices = @transform_2, window_bounds = array<i64: 8, 1>}, {pipeline_mode = #tpu.pipeline_mode<synchronous>, transform_indices = @transform_3, window_bounds = array<i64: 2, 8, 8>}, {pipeline_mode = #tpu.pipeline_mode<synchronous>, transform_indices = @transform_4, window_bounds = array<i64: 2, 8, 1>}, {pipeline_mode = #tpu.pipeline_mode<synchronous>, transform_indices = @transform_5, window_bounds = array<i64: 9, 3, 8, 8>}, {pipeline_mode = #tpu.pipeline_mode<synchronous>, transform_indices = @transform_6, window_bounds = array<i64: 9, 8, 1>}, {pipeline_mode = #tpu.pipeline_mode<synchronous>, transform_indices = @transform_7, window_bounds = array<i64: 9, 8, 8>}, {pipeline_mode = #tpu.pipeline_mode<synchronous>, transform_indices = @transform_8, window_bounds = array<i64: 9, 8, 1>}, {pipeline_mode = #tpu.pipeline_mode<synchronous>, transform_indices = @transform_9, window_bounds = array<i64: 3, 8, 8>}, {pipeline_mode = #tpu.pipeline_mode<synchronous>, transform_indices = @transform_10, window_bounds = array<i64: 3, 8, 1>}, {transform_indices = @transform_11, window_bounds = array<i64: 3, 1, 8, 256>}]} {
    %cst = arith.constant 0.000000e+00 : f32
    %0 = vector.broadcast %cst : f32 to vector<8x128xf32>
    %c0 = arith.constant 0 : index
    %c0_0 = arith.constant 0 : index
    %1 = vector.load %arg13[%c0, %c0_0] : memref<8x512xf32, #tpu.memory_space<vmem>>, vector<8x128xf32>
    tpu.vector_store %arg13[%c0, %c0_0], %0 {strides = array<i32>} : memref<8x512xf32, #tpu.memory_space<vmem>>, vector<8x128xf32>,
    %cst_1 = arith.constant 0.000000e+00 : f32
    %2 = vector.broadcast %cst_1 : f32 to vector<8x128xf32>
    %c0_2 = arith.constant 0 : index
    %c384 = arith.constant 384 : index
    %3 = vector.load %arg13[%c0_2, %c384] : memref<8x512xf32, #tpu.memory_space<vmem>>, vector<8x128xf32>
    tpu.vector_store %arg13[%c0_2, %c384], %2 {strides = array<i32>} : memref<8x512xf32, #tpu.memory_space<vmem>>, vector<8x128xf32>,
    %c0_3 = arith.constant 0 : index
    %c0_4 = arith.constant 0 : index
    %c0_5 = arith.constant 0 : index
    %4 = vector.load %arg1[%c0_3, %c0_4, %c0_5] : memref<1x8x256xf32, #tpu.memory_space<vmem>>, vector<1x8x256xf32>
    %5 = vector.shape_cast %4 : vector<1x8x256xf32> to vector<8x256xf32>
    %c0_6 = arith.constant 0 : index
    %c0_7 = arith.constant 0 : index
    %6 = vector.load %arg2[%c0_6, %c0_7] : memref<8x8xf32, #tpu.memory_space<vmem>>, vector<8x8xf32>
    %c0_8 = arith.constant 0 : index
    %c0_9 = arith.constant 0 : index
    %7 = vector.load %arg3[%c0_8, %c0_9] : memref<8x1xf32, #tpu.memory_space<vmem>>, vector<8x1xf32>
    %cst_10 = arith.constant dense<0.000000e+00> : vector<8x256xf32>
    %8 = tpu.matmul %6, %5, %cst_10 {dimension_numbers = #tpu.dot_dimension_numbers<[1], [0], [0], [1], [0, 0, 1, 1], [], []>} : vector<8x8xf32>, vector<8x256xf32>, vector<8x256xf32> -> vector<8x256xf32>
    %9 = vector.broadcast %7 : vector<8x1xf32> to vector<8x256xf32>
    %10 = arith.addf %8, %9 : vector<8x256xf32>
    %c0_11 = arith.constant 0 : index
    %c128 = arith.constant 128 : index
    %11 = vector.load %arg13[%c0_11, %c128] : memref<8x512xf32, #tpu.memory_space<vmem>>, vector<8x256xf32>
    tpu.vector_store %arg13[%c0_11, %c128], %10 {strides = array<i32>} : memref<8x512xf32, #tpu.memory_space<vmem>>, vector<8x256xf32>,
    %c0_12 = arith.constant 0 : index
    %c128_13 = arith.constant 128 : index
    %12 = vector.load %arg13[%c0_12, %c128_13] : memref<8x512xf32, #tpu.memory_space<vmem>>, vector<8x256xf32>
    %c0_14 = arith.constant 0 : index
    %c127 = arith.constant 127 : index
    %13 = vector.load %arg13[%c0_14, %c127] : memref<8x512xf32, #tpu.memory_space<vmem>>, vector<8x256xf32>
    %c0_15 = arith.constant 0 : index
    %c129 = arith.constant 129 : index
    %14 = vector.load %arg13[%c0_15, %c129] : memref<8x512xf32, #tpu.memory_space<vmem>>, vector<8x256xf32>
    %c0_16 = arith.constant 0 : index
    %c0_17 = arith.constant 0 : index
    %c0_18 = arith.constant 0 : index
    %c0_19 = arith.constant 0 : index
    %15 = vector.load %arg6[%c0_16, %c0_17, %c0_18, %c0_19] : memref<9x3x8x8xf32, #tpu.memory_space<vmem>>, vector<1x1x8x8xf32>
    %16 = vector.shape_cast %15 : vector<1x1x8x8xf32> to vector<8x8xf32>
    %cst_20 = arith.constant dense<0.000000e+00> : vector<8x256xf32>
    %17 = tpu.matmul %16, %13, %cst_20 {dimension_numbers = #tpu.dot_dimension_numbers<[1], [0], [0], [1], [0, 0, 1, 1], [], []>} : vector<8x8xf32>, vector<8x256xf32>, vector<8x256xf32> -> vector<8x256xf32>
    %c0_21 = arith.constant 0 : index
    %c1 = arith.constant 1 : index
    %c0_22 = arith.constant 0 : index
    %c0_23 = arith.constant 0 : index
    %18 = vector.load %arg6[%c0_21, %c1, %c0_22, %c0_23] : memref<9x3x8x8xf32, #tpu.memory_space<vmem>>, vector<1x1x8x8xf32>
    %19 = vector.shape_cast %18 : vector<1x1x8x8xf32> to vector<8x8xf32>
    %cst_24 = arith.constant dense<0.000000e+00> : vector<8x256xf32>
    %20 = tpu.matmul %19, %12, %cst_24 {dimension_numbers = #tpu.dot_dimension_numbers<[1], [0], [0], [1], [0, 0, 1, 1], [], []>} : vector<8x8xf32>, vector<8x256xf32>, vector<8x256xf32> -> vector<8x256xf32>
    %21 = arith.addf %17, %20 : vector<8x256xf32>
    %c0_25 = arith.constant 0 : index
    %c2 = arith.constant 2 : index
    %c0_26 = arith.constant 0 : index
    %c0_27 = arith.constant 0 : index
    %22 = vector.load %arg6[%c0_25, %c2, %c0_26, %c0_27] : memref<9x3x8x8xf32, #tpu.memory_space<vmem>>, vector<1x1x8x8xf32>
    %23 = vector.shape_cast %22 : vector<1x1x8x8xf32> to vector<8x8xf32>
    %cst_28 = arith.constant dense<0.000000e+00> : vector<8x256xf32>
    %24 = tpu.matmul %23, %14, %cst_28 {dimension_numbers = #tpu.dot_dimension_numbers<[1], [0], [0], [1], [0, 0, 1, 1], [], []>} : vector<8x8xf32>, vector<8x256xf32>, vector<8x256xf32> -> vector<8x256xf32>
    %25 = arith.addf %21, %24 : vector<8x256xf32>
    %c0_29 = arith.constant 0 : index
    %c0_30 = arith.constant 0 : index
    %c0_31 = arith.constant 0 : index
    %26 = vector.load %arg7[%c0_29, %c0_30, %c0_31] : memref<9x8x1xf32, #tpu.memory_space<vmem>>, vector<1x8x1xf32>
    %27 = vector.shape_cast %26 : vector<1x8x1xf32> to vector<8x1xf32>
    %28 = vector.broadcast %27 : vector<8x1xf32> to vector<8x256xf32>
    %29 = arith.addf %25, %28 : vector<8x256xf32>
    %cst_32 = arith.constant 0.000000e+00 : f32
    %30 = vector.broadcast %cst_32 : f32 to vector<8x256xf32>
    %31 = arith.maximumf %29, %30 : vector<8x256xf32>
    %c0_33 = arith.constant 0 : index
    %c0_34 = arith.constant 0 : index
    %c0_35 = arith.constant 0 : index
    %32 = vector.load %arg8[%c0_33, %c0_34, %c0_35] : memref<9x8x8xf32, #tpu.memory_space<vmem>>, vector<1x8x8xf32>
    %33 = vector.shape_cast %32 : vector<1x8x8xf32> to vector<8x8xf32>
    %cst_36 = arith.constant dense<0.000000e+00> : vector<8x256xf32>
    %34 = tpu.matmul %33, %31, %cst_36 {dimension_numbers = #tpu.dot_dimension_numbers<[1], [0], [0], [1], [0, 0, 1, 1], [], []>} : vector<8x8xf32>, vector<8x256xf32>, vector<8x256xf32> -> vector<8x256xf32>
    %c0_37 = arith.constant 0 : index
    %c0_38 = arith.constant 0 : index
    %c0_39 = arith.constant 0 : index
    %35 = vector.load %arg9[%c0_37, %c0_38, %c0_39] : memref<9x8x1xf32, #tpu.memory_space<vmem>>, vector<1x8x1xf32>
    %36 = vector.shape_cast %35 : vector<1x8x1xf32> to vector<8x1xf32>
    %37 = vector.broadcast %36 : vector<8x1xf32> to vector<8x256xf32>
    %38 = arith.addf %34, %37 : vector<8x256xf32>
    %39 = arith.addf %12, %38 : vector<8x256xf32>
    %c0_40 = arith.constant 0 : index
    %c128_41 = arith.constant 128 : index
    %40 = vector.load %arg13[%c0_40, %c128_41] : memref<8x512xf32, #tpu.memory_space<vmem>>, vector<8x256xf32>
    tpu.vector_store %arg13[%c0_40, %c128_41], %39 {strides = array<i32>} : memref<8x512xf32, #tpu.memory_space<vmem>>, vector<8x256xf32>,
    %c0_42 = arith.constant 0 : index
    %c128_43 = arith.constant 128 : index
    %41 = vector.load %arg13[%c0_42, %c128_43] : memref<8x512xf32, #tpu.memory_space<vmem>>, vector<8x256xf32>
    %c0_44 = arith.constant 0 : index
    %c126 = arith.constant 126 : index
    %42 = vector.load %arg13[%c0_44, %c126] : memref<8x512xf32, #tpu.memory_space<vmem>>, vector<8x256xf32>
    %c0_45 = arith.constant 0 : index
    %c130 = arith.constant 130 : index
    %43 = vector.load %arg13[%c0_45, %c130] : memref<8x512xf32, #tpu.memory_space<vmem>>, vector<8x256xf32>
    %c1_46 = arith.constant 1 : index
    %c0_47 = arith.constant 0 : index
    %c0_48 = arith.constant 0 : index
    %c0_49 = arith.constant 0 : index
    %44 = vector.load %arg6[%c1_46, %c0_47, %c0_48, %c0_49] : memref<9x3x8x8xf32, #tpu.memory_space<vmem>>, vector<1x1x8x8xf32>
    %45 = vector.shape_cast %44 : vector<1x1x8x8xf32> to vector<8x8xf32>
    %cst_50 = arith.constant dense<0.000000e+00> : vector<8x256xf32>
    %46 = tpu.matmul %45, %42, %cst_50 {dimension_numbers = #tpu.dot_dimension_numbers<[1], [0], [0], [1], [0, 0, 1, 1], [], []>} : vector<8x8xf32>, vector<8x256xf32>, vector<8x256xf32> -> vector<8x256xf32>
    %c1_51 = arith.constant 1 : index
    %c1_52 = arith.constant 1 : index
    %c0_53 = arith.constant 0 : index
    %c0_54 = arith.constant 0 : index
    %47 = vector.load %arg6[%c1_51, %c1_52, %c0_53, %c0_54] : memref<9x3x8x8xf32, #tpu.memory_space<vmem>>, vector<1x1x8x8xf32>
    %48 = vector.shape_cast %47 : vector<1x1x8x8xf32> to vector<8x8xf32>
    %cst_55 = arith.constant dense<0.000000e+00> : vector<8x256xf32>
    %49 = tpu.matmul %48, %41, %cst_55 {dimension_numbers = #tpu.dot_dimension_numbers<[1], [0], [0], [1], [0, 0, 1, 1], [], []>} : vector<8x8xf32>, vector<8x256xf32>, vector<8x256xf32> -> vector<8x256xf32>
    %50 = arith.addf %46, %49 : vector<8x256xf32>
    %c1_56 = arith.constant 1 : index
    %c2_57 = arith.constant 2 : index
    %c0_58 = arith.constant 0 : index
    %c0_59 = arith.constant 0 : index
    %51 = vector.load %arg6[%c1_56, %c2_57, %c0_58, %c0_59] : memref<9x3x8x8xf32, #tpu.memory_space<vmem>>, vector<1x1x8x8xf32>
    %52 = vector.shape_cast %51 : vector<1x1x8x8xf32> to vector<8x8xf32>
    %cst_60 = arith.constant dense<0.000000e+00> : vector<8x256xf32>
    %53 = tpu.matmul %52, %43, %cst_60 {dimension_numbers = #tpu.dot_dimension_numbers<[1], [0], [0], [1], [0, 0, 1, 1], [], []>} : vector<8x8xf32>, vector<8x256xf32>, vector<8x256xf32> -> vector<8x256xf32>
    %54 = arith.addf %50, %53 : vector<8x256xf32>
    %c1_61 = arith.constant 1 : index
    %c0_62 = arith.constant 0 : index
    %c0_63 = arith.constant 0 : index
    %55 = vector.load %arg7[%c1_61, %c0_62, %c0_63] : memref<9x8x1xf32, #tpu.memory_space<vmem>>, vector<1x8x1xf32>
    %56 = vector.shape_cast %55 : vector<1x8x1xf32> to vector<8x1xf32>
    %57 = vector.broadcast %56 : vector<8x1xf32> to vector<8x256xf32>
    %58 = arith.addf %54, %57 : vector<8x256xf32>
    %cst_64 = arith.constant 0.000000e+00 : f32
    %59 = vector.broadcast %cst_64 : f32 to vector<8x256xf32>
    %60 = arith.maximumf %58, %59 : vector<8x256xf32>
    %c1_65 = arith.constant 1 : index
    %c0_66 = arith.constant 0 : index
    %c0_67 = arith.constant 0 : index
    %61 = vector.load %arg8[%c1_65, %c0_66, %c0_67] : memref<9x8x8xf32, #tpu.memory_space<vmem>>, vector<1x8x8xf32>
    %62 = vector.shape_cast %61 : vector<1x8x8xf32> to vector<8x8xf32>
    %cst_68 = arith.constant dense<0.000000e+00> : vector<8x256xf32>
    %63 = tpu.matmul %62, %60, %cst_68 {dimension_numbers = #tpu.dot_dimension_numbers<[1], [0], [0], [1], [0, 0, 1, 1], [], []>} : vector<8x8xf32>, vector<8x256xf32>, vector<8x256xf32> -> vector<8x256xf32>
    %c1_69 = arith.constant 1 : index
    %c0_70 = arith.constant 0 : index
    %c0_71 = arith.constant 0 : index
    %64 = vector.load %arg9[%c1_69, %c0_70, %c0_71] : memref<9x8x1xf32, #tpu.memory_space<vmem>>, vector<1x8x1xf32>
    %65 = vector.shape_cast %64 : vector<1x8x1xf32> to vector<8x1xf32>
    %66 = vector.broadcast %65 : vector<8x1xf32> to vector<8x256xf32>
    %67 = arith.addf %63, %66 : vector<8x256xf32>
    %68 = arith.addf %41, %67 : vector<8x256xf32>
    %c0_72 = arith.constant 0 : index
    %c128_73 = arith.constant 128 : index
    %69 = vector.load %arg13[%c0_72, %c128_73] : memref<8x512xf32, #tpu.memory_space<vmem>>, vector<8x256xf32>
    tpu.vector_store %arg13[%c0_72, %c128_73], %68 {strides = array<i32>} : memref<8x512xf32, #tpu.memory_space<vmem>>, vector<8x256xf32>,
    %c0_74 = arith.constant 0 : index
    %c128_75 = arith.constant 128 : index
    %70 = vector.load %arg13[%c0_74, %c128_75] : memref<8x512xf32, #tpu.memory_space<vmem>>, vector<8x256xf32>
    %c0_76 = arith.constant 0 : index
    %c124 = arith.constant 124 : index
    %71 = vector.load %arg13[%c0_76, %c124] : memref<8x512xf32, #tpu.memory_space<vmem>>, vector<8x256xf32>
    %c0_77 = arith.constant 0 : index
    %c132 = arith.constant 132 : index
    %72 = vector.load %arg13[%c0_77, %c132] : memref<8x512xf32, #tpu.memory_space<vmem>>, vector<8x256xf32>
    %c2_78 = arith.constant 2 : index
    %c0_79 = arith.constant 0 : index
    %c0_80 = arith.constant 0 : index
    %c0_81 = arith.constant 0 : index
    %73 = vector.load %arg6[%c2_78, %c0_79, %c0_80, %c0_81] : memref<9x3x8x8xf32, #tpu.memory_space<vmem>>, vector<1x1x8x8xf32>
    %74 = vector.shape_cast %73 : vector<1x1x8x8xf32> to vector<8x8xf32>
    %cst_82 = arith.constant dense<0.000000e+00> : vector<8x256xf32>
    %75 = tpu.matmul %74, %71, %cst_82 {dimension_numbers = #tpu.dot_dimension_numbers<[1], [0], [0], [1], [0, 0, 1, 1], [], []>} : vector<8x8xf32>, vector<8x256xf32>, vector<8x256xf32> -> vector<8x256xf32>
    %c2_83 = arith.constant 2 : index
    %c1_84 = arith.constant 1 : index
    %c0_85 = arith.constant 0 : index
    %c0_86 = arith.constant 0 : index
    %76 = vector.load %arg6[%c2_83, %c1_84, %c0_85, %c0_86] : memref<9x3x8x8xf32, #tpu.memory_space<vmem>>, vector<1x1x8x8xf32>
    %77 = vector.shape_cast %76 : vector<1x1x8x8xf32> to vector<8x8xf32>
    %cst_87 = arith.constant dense<0.000000e+00> : vector<8x256xf32>
    %78 = tpu.matmul %77, %70, %cst_87 {dimension_numbers = #tpu.dot_dimension_numbers<[1], [0], [0], [1], [0, 0, 1, 1], [], []>} : vector<8x8xf32>, vector<8x256xf32>, vector<8x256xf32> -> vector<8x256xf32>
    %79 = arith.addf %75, %78 : vector<8x256xf32>
    %c2_88 = arith.constant 2 : index
    %c2_89 = arith.constant 2 : index
    %c0_90 = arith.constant 0 : index
    %c0_91 = arith.constant 0 : index
    %80 = vector.load %arg6[%c2_88, %c2_89, %c0_90, %c0_91] : memref<9x3x8x8xf32, #tpu.memory_space<vmem>>, vector<1x1x8x8xf32>
    %81 = vector.shape_cast %80 : vector<1x1x8x8xf32> to vector<8x8xf32>
    %cst_92 = arith.constant dense<0.000000e+00> : vector<8x256xf32>
    %82 = tpu.matmul %81, %72, %cst_92 {dimension_numbers = #tpu.dot_dimension_numbers<[1], [0], [0], [1], [0, 0, 1, 1], [], []>} : vector<8x8xf32>, vector<8x256xf32>, vector<8x256xf32> -> vector<8x256xf32>
    %83 = arith.addf %79, %82 : vector<8x256xf32>
    %c2_93 = arith.constant 2 : index
    %c0_94 = arith.constant 0 : index
    %c0_95 = arith.constant 0 : index
    %84 = vector.load %arg7[%c2_93, %c0_94, %c0_95] : memref<9x8x1xf32, #tpu.memory_space<vmem>>, vector<1x8x1xf32>
    %85 = vector.shape_cast %84 : vector<1x8x1xf32> to vector<8x1xf32>
    %86 = vector.broadcast %85 : vector<8x1xf32> to vector<8x256xf32>
    %87 = arith.addf %83, %86 : vector<8x256xf32>
    %cst_96 = arith.constant 0.000000e+00 : f32
    %88 = vector.broadcast %cst_96 : f32 to vector<8x256xf32>
    %89 = arith.maximumf %87, %88 : vector<8x256xf32>
    %c2_97 = arith.constant 2 : index
    %c0_98 = arith.constant 0 : index
    %c0_99 = arith.constant 0 : index
    %90 = vector.load %arg8[%c2_97, %c0_98, %c0_99] : memref<9x8x8xf32, #tpu.memory_space<vmem>>, vector<1x8x8xf32>
    %91 = vector.shape_cast %90 : vector<1x8x8xf32> to vector<8x8xf32>
    %cst_100 = arith.constant dense<0.000000e+00> : vector<8x256xf32>
    %92 = tpu.matmul %91, %89, %cst_100 {dimension_numbers = #tpu.dot_dimension_numbers<[1], [0], [0], [1], [0, 0, 1, 1], [], []>} : vector<8x8xf32>, vector<8x256xf32>, vector<8x256xf32> -> vector<8x256xf32>
    %c2_101 = arith.constant 2 : index
    %c0_102 = arith.constant 0 : index
    %c0_103 = arith.constant 0 : index
    %93 = vector.load %arg9[%c2_101, %c0_102, %c0_103] : memref<9x8x1xf32, #tpu.memory_space<vmem>>, vector<1x8x1xf32>
    %94 = vector.shape_cast %93 : vector<1x8x1xf32> to vector<8x1xf32>
    %95 = vector.broadcast %94 : vector<8x1xf32> to vector<8x256xf32>
    %96 = arith.addf %92, %95 : vector<8x256xf32>
    %97 = arith.addf %70, %96 : vector<8x256xf32>
    %c0_104 = arith.constant 0 : index
    %c128_105 = arith.constant 128 : index
    %98 = vector.load %arg13[%c0_104, %c128_105] : memref<8x512xf32, #tpu.memory_space<vmem>>, vector<8x256xf32>
    tpu.vector_store %arg13[%c0_104, %c128_105], %97 {strides = array<i32>} : memref<8x512xf32, #tpu.memory_space<vmem>>, vector<8x256xf32>,
    %c0_106 = arith.constant 0 : index
    %c0_107 = arith.constant 0 : index
    %c0_108 = arith.constant 0 : index
    %99 = vector.load %arg10[%c0_106, %c0_107, %c0_108] : memref<3x8x8xf32, #tpu.memory_space<vmem>>, vector<1x8x8xf32>
    %100 = vector.shape_cast %99 : vector<1x8x8xf32> to vector<8x8xf32>
    %c0_109 = arith.constant 0 : index
    %c128_110 = arith.constant 128 : index
    %101 = vector.load %arg13[%c0_109, %c128_110] : memref<8x512xf32, #tpu.memory_space<vmem>>, vector<8x256xf32>
    %cst_111 = arith.constant dense<0.000000e+00> : vector<8x256xf32>
    %102 = tpu.matmul %100, %101, %cst_111 {dimension_numbers = #tpu.dot_dimension_numbers<[1], [0], [0], [1], [0, 0, 1, 1], [], []>} : vector<8x8xf32>, vector<8x256xf32>, vector<8x256xf32> -> vector<8x256xf32>
    %c0_112 = arith.constant 0 : index
    %c0_113 = arith.constant 0 : index
    %c0_114 = arith.constant 0 : index
    %103 = vector.load %arg11[%c0_112, %c0_113, %c0_114] : memref<3x8x1xf32, #tpu.memory_space<vmem>>, vector<1x8x1xf32>
    %104 = vector.shape_cast %103 : vector<1x8x1xf32> to vector<8x1xf32>
    %105 = vector.broadcast %104 : vector<8x1xf32> to vector<8x256xf32>
    %106 = arith.addf %102, %105 : vector<8x256xf32>
    %c0_115 = arith.constant 0 : index
    %c0_116 = arith.constant 0 : index
    %c0_117 = arith.constant 0 : index
    %c0_118 = arith.constant 0 : index
    %107 = vector.load %arg12[%c0_115, %c0_116, %c0_117, %c0_118] : memref<3x1x8x256xf32, #tpu.memory_space<vmem>>, vector<1x1x8x256xf32>
    %108 = vector.shape_cast %107 : vector<1x1x8x256xf32> to vector<8x256xf32>
    %109 = vector.shape_cast %106 : vector<8x256xf32> to vector<1x1x8x256xf32>
    tpu.vector_store %arg12[%c0_115, %c0_116, %c0_117, %c0_118], %109 {strides = array<i32>} : memref<3x1x8x256xf32, #tpu.memory_space<vmem>>, vector<1x1x8x256xf32>,
    %c0_119 = arith.constant 0 : index
    %c0_120 = arith.constant 0 : index
    %c0_121 = arith.constant 0 : index
    %110 = vector.load %arg4[%c0_119, %c0_120, %c0_121] : memref<2x8x8xf32, #tpu.memory_space<vmem>>, vector<1x8x8xf32>
    %111 = vector.shape_cast %110 : vector<1x8x8xf32> to vector<8x8xf32>
    %c0_122 = arith.constant 0 : index
    %c0_123 = arith.constant 0 : index
    %c0_124 = arith.constant 0 : index
    %112 = vector.load %arg5[%c0_122, %c0_123, %c0_124] : memref<2x8x1xf32, #tpu.memory_space<vmem>>, vector<1x8x1xf32>
    %113 = vector.shape_cast %112 : vector<1x8x1xf32> to vector<8x1xf32>
    %cst_125 = arith.constant dense<0.000000e+00> : vector<8x256xf32>
    %114 = tpu.matmul %111, %106, %cst_125 {dimension_numbers = #tpu.dot_dimension_numbers<[1], [0], [0], [1], [0, 0, 1, 1], [], []>} : vector<8x8xf32>, vector<8x256xf32>, vector<8x256xf32> -> vector<8x256xf32>
    %115 = vector.broadcast %113 : vector<8x1xf32> to vector<8x256xf32>
    %116 = arith.addf %114, %115 : vector<8x256xf32>
    %c0_126 = arith.constant 0 : index
    %c128_127 = arith.constant 128 : index
    %117 = vector.load %arg13[%c0_126, %c128_127] : memref<8x512xf32, #tpu.memory_space<vmem>>, vector<8x256xf32>
    tpu.vector_store %arg13[%c0_126, %c128_127], %116 {strides = array<i32>} : memref<8x512xf32, #tpu.memory_space<vmem>>, vector<8x256xf32>,
    %c0_128 = arith.constant 0 : index
    %c128_129 = arith.constant 128 : index
    %118 = vector.load %arg13[%c0_128, %c128_129] : memref<8x512xf32, #tpu.memory_space<vmem>>, vector<8x256xf32>
    %c0_130 = arith.constant 0 : index
    %c127_131 = arith.constant 127 : index
    %119 = vector.load %arg13[%c0_130, %c127_131] : memref<8x512xf32, #tpu.memory_space<vmem>>, vector<8x256xf32>
    %c0_132 = arith.constant 0 : index
    %c129_133 = arith.constant 129 : index
    %120 = vector.load %arg13[%c0_132, %c129_133] : memref<8x512xf32, #tpu.memory_space<vmem>>, vector<8x256xf32>
    %c3 = arith.constant 3 : index
    %c0_134 = arith.constant 0 : index
    %c0_135 = arith.constant 0 : index
    %c0_136 = arith.constant 0 : index
    %121 = vector.load %arg6[%c3, %c0_134, %c0_135, %c0_136] : memref<9x3x8x8xf32, #tpu.memory_space<vmem>>, vector<1x1x8x8xf32>
    %122 = vector.shape_cast %121 : vector<1x1x8x8xf32> to vector<8x8xf32>
    %cst_137 = arith.constant dense<0.000000e+00> : vector<8x256xf32>
    %123 = tpu.matmul %122, %119, %cst_137 {dimension_numbers = #tpu.dot_dimension_numbers<[1], [0], [0], [1], [0, 0, 1, 1], [], []>} : vector<8x8xf32>, vector<8x256xf32>, vector<8x256xf32> -> vector<8x256xf32>
    %c3_138 = arith.constant 3 : index
    %c1_139 = arith.constant 1 : index
    %c0_140 = arith.constant 0 : index
    %c0_141 = arith.constant 0 : index
    %124 = vector.load %arg6[%c3_138, %c1_139, %c0_140, %c0_141] : memref<9x3x8x8xf32, #tpu.memory_space<vmem>>, vector<1x1x8x8xf32>
    %125 = vector.shape_cast %124 : vector<1x1x8x8xf32> to vector<8x8xf32>
    %cst_142 = arith.constant dense<0.000000e+00> : vector<8x256xf32>
    %126 = tpu.matmul %125, %118, %cst_142 {dimension_numbers = #tpu.dot_dimension_numbers<[1], [0], [0], [1], [0, 0, 1, 1], [], []>} : vector<8x8xf32>, vector<8x256xf32>, vector<8x256xf32> -> vector<8x256xf32>
    %127 = arith.addf %123, %126 : vector<8x256xf32>
    %c3_143 = arith.constant 3 : index
    %c2_144 = arith.constant 2 : index
    %c0_145 = arith.constant 0 : index
    %c0_146 = arith.constant 0 : index
    %128 = vector.load %arg6[%c3_143, %c2_144, %c0_145, %c0_146] : memref<9x3x8x8xf32, #tpu.memory_space<vmem>>, vector<1x1x8x8xf32>
    %129 = vector.shape_cast %128 : vector<1x1x8x8xf32> to vector<8x8xf32>
    %cst_147 = arith.constant dense<0.000000e+00> : vector<8x256xf32>
    %130 = tpu.matmul %129, %120, %cst_147 {dimension_numbers = #tpu.dot_dimension_numbers<[1], [0], [0], [1], [0, 0, 1, 1], [], []>} : vector<8x8xf32>, vector<8x256xf32>, vector<8x256xf32> -> vector<8x256xf32>
    %131 = arith.addf %127, %130 : vector<8x256xf32>
    %c3_148 = arith.constant 3 : index
    %c0_149 = arith.constant 0 : index
    %c0_150 = arith.constant 0 : index
    %132 = vector.load %arg7[%c3_148, %c0_149, %c0_150] : memref<9x8x1xf32, #tpu.memory_space<vmem>>, vector<1x8x1xf32>
    %133 = vector.shape_cast %132 : vector<1x8x1xf32> to vector<8x1xf32>
    %134 = vector.broadcast %133 : vector<8x1xf32> to vector<8x256xf32>
    %135 = arith.addf %131, %134 : vector<8x256xf32>
    %cst_151 = arith.constant 0.000000e+00 : f32
    %136 = vector.broadcast %cst_151 : f32 to vector<8x256xf32>
    %137 = arith.maximumf %135, %136 : vector<8x256xf32>
    %c3_152 = arith.constant 3 : index
    %c0_153 = arith.constant 0 : index
    %c0_154 = arith.constant 0 : index
    %138 = vector.load %arg8[%c3_152, %c0_153, %c0_154] : memref<9x8x8xf32, #tpu.memory_space<vmem>>, vector<1x8x8xf32>
    %139 = vector.shape_cast %138 : vector<1x8x8xf32> to vector<8x8xf32>
    %cst_155 = arith.constant dense<0.000000e+00> : vector<8x256xf32>
    %140 = tpu.matmul %139, %137, %cst_155 {dimension_numbers = #tpu.dot_dimension_numbers<[1], [0], [0], [1], [0, 0, 1, 1], [], []>} : vector<8x8xf32>, vector<8x256xf32>, vector<8x256xf32> -> vector<8x256xf32>
    %c3_156 = arith.constant 3 : index
    %c0_157 = arith.constant 0 : index
    %c0_158 = arith.constant 0 : index
    %141 = vector.load %arg9[%c3_156, %c0_157, %c0_158] : memref<9x8x1xf32, #tpu.memory_space<vmem>>, vector<1x8x1xf32>
    %142 = vector.shape_cast %141 : vector<1x8x1xf32> to vector<8x1xf32>
    %143 = vector.broadcast %142 : vector<8x1xf32> to vector<8x256xf32>
    %144 = arith.addf %140, %143 : vector<8x256xf32>
    %145 = arith.addf %118, %144 : vector<8x256xf32>
    %c0_159 = arith.constant 0 : index
    %c128_160 = arith.constant 128 : index
    %146 = vector.load %arg13[%c0_159, %c128_160] : memref<8x512xf32, #tpu.memory_space<vmem>>, vector<8x256xf32>
    tpu.vector_store %arg13[%c0_159, %c128_160], %145 {strides = array<i32>} : memref<8x512xf32, #tpu.memory_space<vmem>>, vector<8x256xf32>,
    %c0_161 = arith.constant 0 : index
    %c128_162 = arith.constant 128 : index
    %147 = vector.load %arg13[%c0_161, %c128_162] : memref<8x512xf32, #tpu.memory_space<vmem>>, vector<8x256xf32>
    %c0_163 = arith.constant 0 : index
    %c126_164 = arith.constant 126 : index
    %148 = vector.load %arg13[%c0_163, %c126_164] : memref<8x512xf32, #tpu.memory_space<vmem>>, vector<8x256xf32>
    %c0_165 = arith.constant 0 : index
    %c130_166 = arith.constant 130 : index
    %149 = vector.load %arg13[%c0_165, %c130_166] : memref<8x512xf32, #tpu.memory_space<vmem>>, vector<8x256xf32>
    %c4 = arith.constant 4 : index
    %c0_167 = arith.constant 0 : index
    %c0_168 = arith.constant 0 : index
    %c0_169 = arith.constant 0 : index
    %150 = vector.load %arg6[%c4, %c0_167, %c0_168, %c0_169] : memref<9x3x8x8xf32, #tpu.memory_space<vmem>>, vector<1x1x8x8xf32>
    %151 = vector.shape_cast %150 : vector<1x1x8x8xf32> to vector<8x8xf32>
    %cst_170 = arith.constant dense<0.000000e+00> : vector<8x256xf32>
    %152 = tpu.matmul %151, %148, %cst_170 {dimension_numbers = #tpu.dot_dimension_numbers<[1], [0], [0], [1], [0, 0, 1, 1], [], []>} : vector<8x8xf32>, vector<8x256xf32>, vector<8x256xf32> -> vector<8x256xf32>
    %c4_171 = arith.constant 4 : index
    %c1_172 = arith.constant 1 : index
    %c0_173 = arith.constant 0 : index
    %c0_174 = arith.constant 0 : index
    %153 = vector.load %arg6[%c4_171, %c1_172, %c0_173, %c0_174] : memref<9x3x8x8xf32, #tpu.memory_space<vmem>>, vector<1x1x8x8xf32>
    %154 = vector.shape_cast %153 : vector<1x1x8x8xf32> to vector<8x8xf32>
    %cst_175 = arith.constant dense<0.000000e+00> : vector<8x256xf32>
    %155 = tpu.matmul %154, %147, %cst_175 {dimension_numbers = #tpu.dot_dimension_numbers<[1], [0], [0], [1], [0, 0, 1, 1], [], []>} : vector<8x8xf32>, vector<8x256xf32>, vector<8x256xf32> -> vector<8x256xf32>
    %156 = arith.addf %152, %155 : vector<8x256xf32>
    %c4_176 = arith.constant 4 : index
    %c2_177 = arith.constant 2 : index
    %c0_178 = arith.constant 0 : index
    %c0_179 = arith.constant 0 : index
    %157 = vector.load %arg6[%c4_176, %c2_177, %c0_178, %c0_179] : memref<9x3x8x8xf32, #tpu.memory_space<vmem>>, vector<1x1x8x8xf32>
    %158 = vector.shape_cast %157 : vector<1x1x8x8xf32> to vector<8x8xf32>
    %cst_180 = arith.constant dense<0.000000e+00> : vector<8x256xf32>
    %159 = tpu.matmul %158, %149, %cst_180 {dimension_numbers = #tpu.dot_dimension_numbers<[1], [0], [0], [1], [0, 0, 1, 1], [], []>} : vector<8x8xf32>, vector<8x256xf32>, vector<8x256xf32> -> vector<8x256xf32>
    %160 = arith.addf %156, %159 : vector<8x256xf32>
    %c4_181 = arith.constant 4 : index
    %c0_182 = arith.constant 0 : index
    %c0_183 = arith.constant 0 : index
    %161 = vector.load %arg7[%c4_181, %c0_182, %c0_183] : memref<9x8x1xf32, #tpu.memory_space<vmem>>, vector<1x8x1xf32>
    %162 = vector.shape_cast %161 : vector<1x8x1xf32> to vector<8x1xf32>
    %163 = vector.broadcast %162 : vector<8x1xf32> to vector<8x256xf32>
    %164 = arith.addf %160, %163 : vector<8x256xf32>
    %cst_184 = arith.constant 0.000000e+00 : f32
    %165 = vector.broadcast %cst_184 : f32 to vector<8x256xf32>
    %166 = arith.maximumf %164, %165 : vector<8x256xf32>
    %c4_185 = arith.constant 4 : index
    %c0_186 = arith.constant 0 : index
    %c0_187 = arith.constant 0 : index
    %167 = vector.load %arg8[%c4_185, %c0_186, %c0_187] : memref<9x8x8xf32, #tpu.memory_space<vmem>>, vector<1x8x8xf32>
    %168 = vector.shape_cast %167 : vector<1x8x8xf32> to vector<8x8xf32>
    %cst_188 = arith.constant dense<0.000000e+00> : vector<8x256xf32>
    %169 = tpu.matmul %168, %166, %cst_188 {dimension_numbers = #tpu.dot_dimension_numbers<[1], [0], [0], [1], [0, 0, 1, 1], [], []>} : vector<8x8xf32>, vector<8x256xf32>, vector<8x256xf32> -> vector<8x256xf32>
    %c4_189 = arith.constant 4 : index
    %c0_190 = arith.constant 0 : index
    %c0_191 = arith.constant 0 : index
    %170 = vector.load %arg9[%c4_189, %c0_190, %c0_191] : memref<9x8x1xf32, #tpu.memory_space<vmem>>, vector<1x8x1xf32>
    %171 = vector.shape_cast %170 : vector<1x8x1xf32> to vector<8x1xf32>
    %172 = vector.broadcast %171 : vector<8x1xf32> to vector<8x256xf32>
    %173 = arith.addf %169, %172 : vector<8x256xf32>
    %174 = arith.addf %147, %173 : vector<8x256xf32>
    %c0_192 = arith.constant 0 : index
    %c128_193 = arith.constant 128 : index
    %175 = vector.load %arg13[%c0_192, %c128_193] : memref<8x512xf32, #tpu.memory_space<vmem>>, vector<8x256xf32>
    tpu.vector_store %arg13[%c0_192, %c128_193], %174 {strides = array<i32>} : memref<8x512xf32, #tpu.memory_space<vmem>>, vector<8x256xf32>,
    %c0_194 = arith.constant 0 : index
    %c128_195 = arith.constant 128 : index
    %176 = vector.load %arg13[%c0_194, %c128_195] : memref<8x512xf32, #tpu.memory_space<vmem>>, vector<8x256xf32>
    %c0_196 = arith.constant 0 : index
    %c124_197 = arith.constant 124 : index
    %177 = vector.load %arg13[%c0_196, %c124_197] : memref<8x512xf32, #tpu.memory_space<vmem>>, vector<8x256xf32>
    %c0_198 = arith.constant 0 : index
    %c132_199 = arith.constant 132 : index
    %178 = vector.load %arg13[%c0_198, %c132_199] : memref<8x512xf32, #tpu.memory_space<vmem>>, vector<8x256xf32>
    %c5 = arith.constant 5 : index
    %c0_200 = arith.constant 0 : index
    %c0_201 = arith.constant 0 : index
    %c0_202 = arith.constant 0 : index
    %179 = vector.load %arg6[%c5, %c0_200, %c0_201, %c0_202] : memref<9x3x8x8xf32, #tpu.memory_space<vmem>>, vector<1x1x8x8xf32>
    %180 = vector.shape_cast %179 : vector<1x1x8x8xf32> to vector<8x8xf32>
    %cst_203 = arith.constant dense<0.000000e+00> : vector<8x256xf32>
    %181 = tpu.matmul %180, %177, %cst_203 {dimension_numbers = #tpu.dot_dimension_numbers<[1], [0], [0], [1], [0, 0, 1, 1], [], []>} : vector<8x8xf32>, vector<8x256xf32>, vector<8x256xf32> -> vector<8x256xf32>
    %c5_204 = arith.constant 5 : index
    %c1_205 = arith.constant 1 : index
    %c0_206 = arith.constant 0 : index
    %c0_207 = arith.constant 0 : index
    %182 = vector.load %arg6[%c5_204, %c1_205, %c0_206, %c0_207] : memref<9x3x8x8xf32, #tpu.memory_space<vmem>>, vector<1x1x8x8xf32>
    %183 = vector.shape_cast %182 : vector<1x1x8x8xf32> to vector<8x8xf32>
    %cst_208 = arith.constant dense<0.000000e+00> : vector<8x256xf32>
    %184 = tpu.matmul %183, %176, %cst_208 {dimension_numbers = #tpu.dot_dimension_numbers<[1], [0], [0], [1], [0, 0, 1, 1], [], []>} : vector<8x8xf32>, vector<8x256xf32>, vector<8x256xf32> -> vector<8x256xf32>
    %185 = arith.addf %181, %184 : vector<8x256xf32>
    %c5_209 = arith.constant 5 : index
    %c2_210 = arith.constant 2 : index
    %c0_211 = arith.constant 0 : index
    %c0_212 = arith.constant 0 : index
    %186 = vector.load %arg6[%c5_209, %c2_210, %c0_211, %c0_212] : memref<9x3x8x8xf32, #tpu.memory_space<vmem>>, vector<1x1x8x8xf32>
    %187 = vector.shape_cast %186 : vector<1x1x8x8xf32> to vector<8x8xf32>
    %cst_213 = arith.constant dense<0.000000e+00> : vector<8x256xf32>
    %188 = tpu.matmul %187, %178, %cst_213 {dimension_numbers = #tpu.dot_dimension_numbers<[1], [0], [0], [1], [0, 0, 1, 1], [], []>} : vector<8x8xf32>, vector<8x256xf32>, vector<8x256xf32> -> vector<8x256xf32>
    %189 = arith.addf %185, %188 : vector<8x256xf32>
    %c5_214 = arith.constant 5 : index
    %c0_215 = arith.constant 0 : index
    %c0_216 = arith.constant 0 : index
    %190 = vector.load %arg7[%c5_214, %c0_215, %c0_216] : memref<9x8x1xf32, #tpu.memory_space<vmem>>, vector<1x8x1xf32>
    %191 = vector.shape_cast %190 : vector<1x8x1xf32> to vector<8x1xf32>
    %192 = vector.broadcast %191 : vector<8x1xf32> to vector<8x256xf32>
    %193 = arith.addf %189, %192 : vector<8x256xf32>
    %cst_217 = arith.constant 0.000000e+00 : f32
    %194 = vector.broadcast %cst_217 : f32 to vector<8x256xf32>
    %195 = arith.maximumf %193, %194 : vector<8x256xf32>
    %c5_218 = arith.constant 5 : index
    %c0_219 = arith.constant 0 : index
    %c0_220 = arith.constant 0 : index
    %196 = vector.load %arg8[%c5_218, %c0_219, %c0_220] : memref<9x8x8xf32, #tpu.memory_space<vmem>>, vector<1x8x8xf32>
    %197 = vector.shape_cast %196 : vector<1x8x8xf32> to vector<8x8xf32>
    %cst_221 = arith.constant dense<0.000000e+00> : vector<8x256xf32>
    %198 = tpu.matmul %197, %195, %cst_221 {dimension_numbers = #tpu.dot_dimension_numbers<[1], [0], [0], [1], [0, 0, 1, 1], [], []>} : vector<8x8xf32>, vector<8x256xf32>, vector<8x256xf32> -> vector<8x256xf32>
    %c5_222 = arith.constant 5 : index
    %c0_223 = arith.constant 0 : index
    %c0_224 = arith.constant 0 : index
    %199 = vector.load %arg9[%c5_222, %c0_223, %c0_224] : memref<9x8x1xf32, #tpu.memory_space<vmem>>, vector<1x8x1xf32>
    %200 = vector.shape_cast %199 : vector<1x8x1xf32> to vector<8x1xf32>
    %201 = vector.broadcast %200 : vector<8x1xf32> to vector<8x256xf32>
    %202 = arith.addf %198, %201 : vector<8x256xf32>
    %203 = arith.addf %176, %202 : vector<8x256xf32>
    %c0_225 = arith.constant 0 : index
    %c128_226 = arith.constant 128 : index
    %204 = vector.load %arg13[%c0_225, %c128_226] : memref<8x512xf32, #tpu.memory_space<vmem>>, vector<8x256xf32>
    tpu.vector_store %arg13[%c0_225, %c128_226], %203 {strides = array<i32>} : memref<8x512xf32, #tpu.memory_space<vmem>>, vector<8x256xf32>,
    %c1_227 = arith.constant 1 : index
    %c0_228 = arith.constant 0 : index
    %c0_229 = arith.constant 0 : index
    %205 = vector.load %arg10[%c1_227, %c0_228, %c0_229] : memref<3x8x8xf32, #tpu.memory_space<vmem>>, vector<1x8x8xf32>
    %206 = vector.shape_cast %205 : vector<1x8x8xf32> to vector<8x8xf32>
    %c0_230 = arith.constant 0 : index
    %c128_231 = arith.constant 128 : index
    %207 = vector.load %arg13[%c0_230, %c128_231] : memref<8x512xf32, #tpu.memory_space<vmem>>, vector<8x256xf32>
    %cst_232 = arith.constant dense<0.000000e+00> : vector<8x256xf32>
    %208 = tpu.matmul %206, %207, %cst_232 {dimension_numbers = #tpu.dot_dimension_numbers<[1], [0], [0], [1], [0, 0, 1, 1], [], []>} : vector<8x8xf32>, vector<8x256xf32>, vector<8x256xf32> -> vector<8x256xf32>
    %c1_233 = arith.constant 1 : index
    %c0_234 = arith.constant 0 : index
    %c0_235 = arith.constant 0 : index
    %209 = vector.load %arg11[%c1_233, %c0_234, %c0_235] : memref<3x8x1xf32, #tpu.memory_space<vmem>>, vector<1x8x1xf32>
    %210 = vector.shape_cast %209 : vector<1x8x1xf32> to vector<8x1xf32>
    %211 = vector.broadcast %210 : vector<8x1xf32> to vector<8x256xf32>
    %212 = arith.addf %208, %211 : vector<8x256xf32>
    %c1_236 = arith.constant 1 : index
    %c0_237 = arith.constant 0 : index
    %c0_238 = arith.constant 0 : index
    %c0_239 = arith.constant 0 : index
    %213 = vector.load %arg12[%c1_236, %c0_237, %c0_238, %c0_239] : memref<3x1x8x256xf32, #tpu.memory_space<vmem>>, vector<1x1x8x256xf32>
    %214 = vector.shape_cast %213 : vector<1x1x8x256xf32> to vector<8x256xf32>
    %215 = vector.shape_cast %212 : vector<8x256xf32> to vector<1x1x8x256xf32>
    tpu.vector_store %arg12[%c1_236, %c0_237, %c0_238, %c0_239], %215 {strides = array<i32>} : memref<3x1x8x256xf32, #tpu.memory_space<vmem>>, vector<1x1x8x256xf32>,
    %c1_240 = arith.constant 1 : index
    %c0_241 = arith.constant 0 : index
    %c0_242 = arith.constant 0 : index
    %216 = vector.load %arg4[%c1_240, %c0_241, %c0_242] : memref<2x8x8xf32, #tpu.memory_space<vmem>>, vector<1x8x8xf32>
    %217 = vector.shape_cast %216 : vector<1x8x8xf32> to vector<8x8xf32>
    %c1_243 = arith.constant 1 : index
    %c0_244 = arith.constant 0 : index
    %c0_245 = arith.constant 0 : index
    %218 = vector.load %arg5[%c1_243, %c0_244, %c0_245] : memref<2x8x1xf32, #tpu.memory_space<vmem>>, vector<1x8x1xf32>
    %219 = vector.shape_cast %218 : vector<1x8x1xf32> to vector<8x1xf32>
    %cst_246 = arith.constant dense<0.000000e+00> : vector<8x256xf32>
    %220 = tpu.matmul %217, %212, %cst_246 {dimension_numbers = #tpu.dot_dimension_numbers<[1], [0], [0], [1], [0, 0, 1, 1], [], []>} : vector<8x8xf32>, vector<8x256xf32>, vector<8x256xf32> -> vector<8x256xf32>
    %221 = vector.broadcast %219 : vector<8x1xf32> to vector<8x256xf32>
    %222 = arith.addf %220, %221 : vector<8x256xf32>
    %c0_247 = arith.constant 0 : index
    %c128_248 = arith.constant 128 : index
    %223 = vector.load %arg13[%c0_247, %c128_248] : memref<8x512xf32, #tpu.memory_space<vmem>>, vector<8x256xf32>
    tpu.vector_store %arg13[%c0_247, %c128_248], %222 {strides = array<i32>} : memref<8x512xf32, #tpu.memory_space<vmem>>, vector<8x256xf32>,
    %c0_249 = arith.constant 0 : index
    %c128_250 = arith.constant 128 : index
    %224 = vector.load %arg13[%c0_249, %c128_250] : memref<8x512xf32, #tpu.memory_space<vmem>>, vector<8x256xf32>
    %c0_251 = arith.constant 0 : index
    %c127_252 = arith.constant 127 : index
    %225 = vector.load %arg13[%c0_251, %c127_252] : memref<8x512xf32, #tpu.memory_space<vmem>>, vector<8x256xf32>
    %c0_253 = arith.constant 0 : index
    %c129_254 = arith.constant 129 : index
    %226 = vector.load %arg13[%c0_253, %c129_254] : memref<8x512xf32, #tpu.memory_space<vmem>>, vector<8x256xf32>
    %c6 = arith.constant 6 : index
    %c0_255 = arith.constant 0 : index
    %c0_256 = arith.constant 0 : index
    %c0_257 = arith.constant 0 : index
    %227 = vector.load %arg6[%c6, %c0_255, %c0_256, %c0_257] : memref<9x3x8x8xf32, #tpu.memory_space<vmem>>, vector<1x1x8x8xf32>
    %228 = vector.shape_cast %227 : vector<1x1x8x8xf32> to vector<8x8xf32>
    %cst_258 = arith.constant dense<0.000000e+00> : vector<8x256xf32>
    %229 = tpu.matmul %228, %225, %cst_258 {dimension_numbers = #tpu.dot_dimension_numbers<[1], [0], [0], [1], [0, 0, 1, 1], [], []>} : vector<8x8xf32>, vector<8x256xf32>, vector<8x256xf32> -> vector<8x256xf32>
    %c6_259 = arith.constant 6 : index
    %c1_260 = arith.constant 1 : index
    %c0_261 = arith.constant 0 : index
    %c0_262 = arith.constant 0 : index
    %230 = vector.load %arg6[%c6_259, %c1_260, %c0_261, %c0_262] : memref<9x3x8x8xf32, #tpu.memory_space<vmem>>, vector<1x1x8x8xf32>
    %231 = vector.shape_cast %230 : vector<1x1x8x8xf32> to vector<8x8xf32>
    %cst_263 = arith.constant dense<0.000000e+00> : vector<8x256xf32>
    %232 = tpu.matmul %231, %224, %cst_263 {dimension_numbers = #tpu.dot_dimension_numbers<[1], [0], [0], [1], [0, 0, 1, 1], [], []>} : vector<8x8xf32>, vector<8x256xf32>, vector<8x256xf32> -> vector<8x256xf32>
    %233 = arith.addf %229, %232 : vector<8x256xf32>
    %c6_264 = arith.constant 6 : index
    %c2_265 = arith.constant 2 : index
    %c0_266 = arith.constant 0 : index
    %c0_267 = arith.constant 0 : index
    %234 = vector.load %arg6[%c6_264, %c2_265, %c0_266, %c0_267] : memref<9x3x8x8xf32, #tpu.memory_space<vmem>>, vector<1x1x8x8xf32>
    %235 = vector.shape_cast %234 : vector<1x1x8x8xf32> to vector<8x8xf32>
    %cst_268 = arith.constant dense<0.000000e+00> : vector<8x256xf32>
    %236 = tpu.matmul %235, %226, %cst_268 {dimension_numbers = #tpu.dot_dimension_numbers<[1], [0], [0], [1], [0, 0, 1, 1], [], []>} : vector<8x8xf32>, vector<8x256xf32>, vector<8x256xf32> -> vector<8x256xf32>
    %237 = arith.addf %233, %236 : vector<8x256xf32>
    %c6_269 = arith.constant 6 : index
    %c0_270 = arith.constant 0 : index
    %c0_271 = arith.constant 0 : index
    %238 = vector.load %arg7[%c6_269, %c0_270, %c0_271] : memref<9x8x1xf32, #tpu.memory_space<vmem>>, vector<1x8x1xf32>
    %239 = vector.shape_cast %238 : vector<1x8x1xf32> to vector<8x1xf32>
    %240 = vector.broadcast %239 : vector<8x1xf32> to vector<8x256xf32>
    %241 = arith.addf %237, %240 : vector<8x256xf32>
    %cst_272 = arith.constant 0.000000e+00 : f32
    %242 = vector.broadcast %cst_272 : f32 to vector<8x256xf32>
    %243 = arith.maximumf %241, %242 : vector<8x256xf32>
    %c6_273 = arith.constant 6 : index
    %c0_274 = arith.constant 0 : index
    %c0_275 = arith.constant 0 : index
    %244 = vector.load %arg8[%c6_273, %c0_274, %c0_275] : memref<9x8x8xf32, #tpu.memory_space<vmem>>, vector<1x8x8xf32>
    %245 = vector.shape_cast %244 : vector<1x8x8xf32> to vector<8x8xf32>
    %cst_276 = arith.constant dense<0.000000e+00> : vector<8x256xf32>
    %246 = tpu.matmul %245, %243, %cst_276 {dimension_numbers = #tpu.dot_dimension_numbers<[1], [0], [0], [1], [0, 0, 1, 1], [], []>} : vector<8x8xf32>, vector<8x256xf32>, vector<8x256xf32> -> vector<8x256xf32>
    %c6_277 = arith.constant 6 : index
    %c0_278 = arith.constant 0 : index
    %c0_279 = arith.constant 0 : index
    %247 = vector.load %arg9[%c6_277, %c0_278, %c0_279] : memref<9x8x1xf32, #tpu.memory_space<vmem>>, vector<1x8x1xf32>
    %248 = vector.shape_cast %247 : vector<1x8x1xf32> to vector<8x1xf32>
    %249 = vector.broadcast %248 : vector<8x1xf32> to vector<8x256xf32>
    %250 = arith.addf %246, %249 : vector<8x256xf32>
    %251 = arith.addf %224, %250 : vector<8x256xf32>
    %c0_280 = arith.constant 0 : index
    %c128_281 = arith.constant 128 : index
    %252 = vector.load %arg13[%c0_280, %c128_281] : memref<8x512xf32, #tpu.memory_space<vmem>>, vector<8x256xf32>
    tpu.vector_store %arg13[%c0_280, %c128_281], %251 {strides = array<i32>} : memref<8x512xf32, #tpu.memory_space<vmem>>, vector<8x256xf32>,
    %c0_282 = arith.constant 0 : index
    %c128_283 = arith.constant 128 : index
    %253 = vector.load %arg13[%c0_282, %c128_283] : memref<8x512xf32, #tpu.memory_space<vmem>>, vector<8x256xf32>
    %c0_284 = arith.constant 0 : index
    %c126_285 = arith.constant 126 : index
    %254 = vector.load %arg13[%c0_284, %c126_285] : memref<8x512xf32, #tpu.memory_space<vmem>>, vector<8x256xf32>
    %c0_286 = arith.constant 0 : index
    %c130_287 = arith.constant 130 : index
    %255 = vector.load %arg13[%c0_286, %c130_287] : memref<8x512xf32, #tpu.memory_space<vmem>>, vector<8x256xf32>
    %c7 = arith.constant 7 : index
    %c0_288 = arith.constant 0 : index
    %c0_289 = arith.constant 0 : index
    %c0_290 = arith.constant 0 : index
    %256 = vector.load %arg6[%c7, %c0_288, %c0_289, %c0_290] : memref<9x3x8x8xf32, #tpu.memory_space<vmem>>, vector<1x1x8x8xf32>
    %257 = vector.shape_cast %256 : vector<1x1x8x8xf32> to vector<8x8xf32>
    %cst_291 = arith.constant dense<0.000000e+00> : vector<8x256xf32>
    %258 = tpu.matmul %257, %254, %cst_291 {dimension_numbers = #tpu.dot_dimension_numbers<[1], [0], [0], [1], [0, 0, 1, 1], [], []>} : vector<8x8xf32>, vector<8x256xf32>, vector<8x256xf32> -> vector<8x256xf32>
    %c7_292 = arith.constant 7 : index
    %c1_293 = arith.constant 1 : index
    %c0_294 = arith.constant 0 : index
    %c0_295 = arith.constant 0 : index
    %259 = vector.load %arg6[%c7_292, %c1_293, %c0_294, %c0_295] : memref<9x3x8x8xf32, #tpu.memory_space<vmem>>, vector<1x1x8x8xf32>
    %260 = vector.shape_cast %259 : vector<1x1x8x8xf32> to vector<8x8xf32>
    %cst_296 = arith.constant dense<0.000000e+00> : vector<8x256xf32>
    %261 = tpu.matmul %260, %253, %cst_296 {dimension_numbers = #tpu.dot_dimension_numbers<[1], [0], [0], [1], [0, 0, 1, 1], [], []>} : vector<8x8xf32>, vector<8x256xf32>, vector<8x256xf32> -> vector<8x256xf32>
    %262 = arith.addf %258, %261 : vector<8x256xf32>
    %c7_297 = arith.constant 7 : index
    %c2_298 = arith.constant 2 : index
    %c0_299 = arith.constant 0 : index
    %c0_300 = arith.constant 0 : index
    %263 = vector.load %arg6[%c7_297, %c2_298, %c0_299, %c0_300] : memref<9x3x8x8xf32, #tpu.memory_space<vmem>>, vector<1x1x8x8xf32>
    %264 = vector.shape_cast %263 : vector<1x1x8x8xf32> to vector<8x8xf32>
    %cst_301 = arith.constant dense<0.000000e+00> : vector<8x256xf32>
    %265 = tpu.matmul %264, %255, %cst_301 {dimension_numbers = #tpu.dot_dimension_numbers<[1], [0], [0], [1], [0, 0, 1, 1], [], []>} : vector<8x8xf32>, vector<8x256xf32>, vector<8x256xf32> -> vector<8x256xf32>
    %266 = arith.addf %262, %265 : vector<8x256xf32>
    %c7_302 = arith.constant 7 : index
    %c0_303 = arith.constant 0 : index
    %c0_304 = arith.constant 0 : index
    %267 = vector.load %arg7[%c7_302, %c0_303, %c0_304] : memref<9x8x1xf32, #tpu.memory_space<vmem>>, vector<1x8x1xf32>
    %268 = vector.shape_cast %267 : vector<1x8x1xf32> to vector<8x1xf32>
    %269 = vector.broadcast %268 : vector<8x1xf32> to vector<8x256xf32>
    %270 = arith.addf %266, %269 : vector<8x256xf32>
    %cst_305 = arith.constant 0.000000e+00 : f32
    %271 = vector.broadcast %cst_305 : f32 to vector<8x256xf32>
    %272 = arith.maximumf %270, %271 : vector<8x256xf32>
    %c7_306 = arith.constant 7 : index
    %c0_307 = arith.constant 0 : index
    %c0_308 = arith.constant 0 : index
    %273 = vector.load %arg8[%c7_306, %c0_307, %c0_308] : memref<9x8x8xf32, #tpu.memory_space<vmem>>, vector<1x8x8xf32>
    %274 = vector.shape_cast %273 : vector<1x8x8xf32> to vector<8x8xf32>
    %cst_309 = arith.constant dense<0.000000e+00> : vector<8x256xf32>
    %275 = tpu.matmul %274, %272, %cst_309 {dimension_numbers = #tpu.dot_dimension_numbers<[1], [0], [0], [1], [0, 0, 1, 1], [], []>} : vector<8x8xf32>, vector<8x256xf32>, vector<8x256xf32> -> vector<8x256xf32>
    %c7_310 = arith.constant 7 : index
    %c0_311 = arith.constant 0 : index
    %c0_312 = arith.constant 0 : index
    %276 = vector.load %arg9[%c7_310, %c0_311, %c0_312] : memref<9x8x1xf32, #tpu.memory_space<vmem>>, vector<1x8x1xf32>
    %277 = vector.shape_cast %276 : vector<1x8x1xf32> to vector<8x1xf32>
    %278 = vector.broadcast %277 : vector<8x1xf32> to vector<8x256xf32>
    %279 = arith.addf %275, %278 : vector<8x256xf32>
    %280 = arith.addf %253, %279 : vector<8x256xf32>
    %c0_313 = arith.constant 0 : index
    %c128_314 = arith.constant 128 : index
    %281 = vector.load %arg13[%c0_313, %c128_314] : memref<8x512xf32, #tpu.memory_space<vmem>>, vector<8x256xf32>
    tpu.vector_store %arg13[%c0_313, %c128_314], %280 {strides = array<i32>} : memref<8x512xf32, #tpu.memory_space<vmem>>, vector<8x256xf32>,
    %c0_315 = arith.constant 0 : index
    %c128_316 = arith.constant 128 : index
    %282 = vector.load %arg13[%c0_315, %c128_316] : memref<8x512xf32, #tpu.memory_space<vmem>>, vector<8x256xf32>
    %c0_317 = arith.constant 0 : index
    %c124_318 = arith.constant 124 : index
    %283 = vector.load %arg13[%c0_317, %c124_318] : memref<8x512xf32, #tpu.memory_space<vmem>>, vector<8x256xf32>
    %c0_319 = arith.constant 0 : index
    %c132_320 = arith.constant 132 : index
    %284 = vector.load %arg13[%c0_319, %c132_320] : memref<8x512xf32, #tpu.memory_space<vmem>>, vector<8x256xf32>
    %c8 = arith.constant 8 : index
    %c0_321 = arith.constant 0 : index
    %c0_322 = arith.constant 0 : index
    %c0_323 = arith.constant 0 : index
    %285 = vector.load %arg6[%c8, %c0_321, %c0_322, %c0_323] : memref<9x3x8x8xf32, #tpu.memory_space<vmem>>, vector<1x1x8x8xf32>
    %286 = vector.shape_cast %285 : vector<1x1x8x8xf32> to vector<8x8xf32>
    %cst_324 = arith.constant dense<0.000000e+00> : vector<8x256xf32>
    %287 = tpu.matmul %286, %283, %cst_324 {dimension_numbers = #tpu.dot_dimension_numbers<[1], [0], [0], [1], [0, 0, 1, 1], [], []>} : vector<8x8xf32>, vector<8x256xf32>, vector<8x256xf32> -> vector<8x256xf32>
    %c8_325 = arith.constant 8 : index
    %c1_326 = arith.constant 1 : index
    %c0_327 = arith.constant 0 : index
    %c0_328 = arith.constant 0 : index
    %288 = vector.load %arg6[%c8_325, %c1_326, %c0_327, %c0_328] : memref<9x3x8x8xf32, #tpu.memory_space<vmem>>, vector<1x1x8x8xf32>
    %289 = vector.shape_cast %288 : vector<1x1x8x8xf32> to vector<8x8xf32>
    %cst_329 = arith.constant dense<0.000000e+00> : vector<8x256xf32>
    %290 = tpu.matmul %289, %282, %cst_329 {dimension_numbers = #tpu.dot_dimension_numbers<[1], [0], [0], [1], [0, 0, 1, 1], [], []>} : vector<8x8xf32>, vector<8x256xf32>, vector<8x256xf32> -> vector<8x256xf32>
    %291 = arith.addf %287, %290 : vector<8x256xf32>
    %c8_330 = arith.constant 8 : index
    %c2_331 = arith.constant 2 : index
    %c0_332 = arith.constant 0 : index
    %c0_333 = arith.constant 0 : index
    %292 = vector.load %arg6[%c8_330, %c2_331, %c0_332, %c0_333] : memref<9x3x8x8xf32, #tpu.memory_space<vmem>>, vector<1x1x8x8xf32>
    %293 = vector.shape_cast %292 : vector<1x1x8x8xf32> to vector<8x8xf32>
    %cst_334 = arith.constant dense<0.000000e+00> : vector<8x256xf32>
    %294 = tpu.matmul %293, %284, %cst_334 {dimension_numbers = #tpu.dot_dimension_numbers<[1], [0], [0], [1], [0, 0, 1, 1], [], []>} : vector<8x8xf32>, vector<8x256xf32>, vector<8x256xf32> -> vector<8x256xf32>
    %295 = arith.addf %291, %294 : vector<8x256xf32>
    %c8_335 = arith.constant 8 : index
    %c0_336 = arith.constant 0 : index
    %c0_337 = arith.constant 0 : index
    %296 = vector.load %arg7[%c8_335, %c0_336, %c0_337] : memref<9x8x1xf32, #tpu.memory_space<vmem>>, vector<1x8x1xf32>
    %297 = vector.shape_cast %296 : vector<1x8x1xf32> to vector<8x1xf32>
    %298 = vector.broadcast %297 : vector<8x1xf32> to vector<8x256xf32>
    %299 = arith.addf %295, %298 : vector<8x256xf32>
    %cst_338 = arith.constant 0.000000e+00 : f32
    %300 = vector.broadcast %cst_338 : f32 to vector<8x256xf32>
    %301 = arith.maximumf %299, %300 : vector<8x256xf32>
    %c8_339 = arith.constant 8 : index
    %c0_340 = arith.constant 0 : index
    %c0_341 = arith.constant 0 : index
    %302 = vector.load %arg8[%c8_339, %c0_340, %c0_341] : memref<9x8x8xf32, #tpu.memory_space<vmem>>, vector<1x8x8xf32>
    %303 = vector.shape_cast %302 : vector<1x8x8xf32> to vector<8x8xf32>
    %cst_342 = arith.constant dense<0.000000e+00> : vector<8x256xf32>
    %304 = tpu.matmul %303, %301, %cst_342 {dimension_numbers = #tpu.dot_dimension_numbers<[1], [0], [0], [1], [0, 0, 1, 1], [], []>} : vector<8x8xf32>, vector<8x256xf32>, vector<8x256xf32> -> vector<8x256xf32>
    %c8_343 = arith.constant 8 : index
    %c0_344 = arith.constant 0 : index
    %c0_345 = arith.constant 0 : index
    %305 = vector.load %arg9[%c8_343, %c0_344, %c0_345] : memref<9x8x1xf32, #tpu.memory_space<vmem>>, vector<1x8x1xf32>
    %306 = vector.shape_cast %305 : vector<1x8x1xf32> to vector<8x1xf32>
    %307 = vector.broadcast %306 : vector<8x1xf32> to vector<8x256xf32>
    %308 = arith.addf %304, %307 : vector<8x256xf32>
    %309 = arith.addf %282, %308 : vector<8x256xf32>
    %c0_346 = arith.constant 0 : index
    %c128_347 = arith.constant 128 : index
    %310 = vector.load %arg13[%c0_346, %c128_347] : memref<8x512xf32, #tpu.memory_space<vmem>>, vector<8x256xf32>
    tpu.vector_store %arg13[%c0_346, %c128_347], %309 {strides = array<i32>} : memref<8x512xf32, #tpu.memory_space<vmem>>, vector<8x256xf32>,
    %c2_348 = arith.constant 2 : index
    %c0_349 = arith.constant 0 : index
    %c0_350 = arith.constant 0 : index
    %311 = vector.load %arg10[%c2_348, %c0_349, %c0_350] : memref<3x8x8xf32, #tpu.memory_space<vmem>>, vector<1x8x8xf32>
    %312 = vector.shape_cast %311 : vector<1x8x8xf32> to vector<8x8xf32>
    %c0_351 = arith.constant 0 : index
    %c128_352 = arith.constant 128 : index
    %313 = vector.load %arg13[%c0_351, %c128_352] : memref<8x512xf32, #tpu.memory_space<vmem>>, vector<8x256xf32>
    %cst_353 = arith.constant dense<0.000000e+00> : vector<8x256xf32>
    %314 = tpu.matmul %312, %313, %cst_353 {dimension_numbers = #tpu.dot_dimension_numbers<[1], [0], [0], [1], [0, 0, 1, 1], [], []>} : vector<8x8xf32>, vector<8x256xf32>, vector<8x256xf32> -> vector<8x256xf32>
    %c2_354 = arith.constant 2 : index
    %c0_355 = arith.constant 0 : index
    %c0_356 = arith.constant 0 : index
    %315 = vector.load %arg11[%c2_354, %c0_355, %c0_356] : memref<3x8x1xf32, #tpu.memory_space<vmem>>, vector<1x8x1xf32>
    %316 = vector.shape_cast %315 : vector<1x8x1xf32> to vector<8x1xf32>
    %317 = vector.broadcast %316 : vector<8x1xf32> to vector<8x256xf32>
    %318 = arith.addf %314, %317 : vector<8x256xf32>
    %c2_357 = arith.constant 2 : index
    %c0_358 = arith.constant 0 : index
    %c0_359 = arith.constant 0 : index
    %c0_360 = arith.constant 0 : index
    %319 = vector.load %arg12[%c2_357, %c0_358, %c0_359, %c0_360] : memref<3x1x8x256xf32, #tpu.memory_space<vmem>>, vector<1x1x8x256xf32>
    %320 = vector.shape_cast %319 : vector<1x1x8x256xf32> to vector<8x256xf32>
    %321 = vector.shape_cast %318 : vector<8x256xf32> to vector<1x1x8x256xf32>
    tpu.vector_store %arg12[%c2_357, %c0_358, %c0_359, %c0_360], %321 {strides = array<i32>} : memref<3x1x8x256xf32, #tpu.memory_space<vmem>>, vector<1x1x8x256xf32>,
    return
  }
  func.func @transform_0(%arg0: i32) -> (i32, i32, i32) {
    %c0_i32 = arith.constant 0 : i32
    %c0_i32_0 = arith.constant 0 : i32
    %c0_i32_1 = arith.constant 0 : i32
    return %arg0, %c0_i32, %c0_i32_0 : i32, i32, i32
  }
  func.func @transform_1(%arg0: i32) -> (i32, i32) {
    %c0_i32 = arith.constant 0 : i32
    %c0_i32_0 = arith.constant 0 : i32
    %c0_i32_1 = arith.constant 0 : i32
    return %c0_i32, %c0_i32_0 : i32, i32
  }
  func.func @transform_2(%arg0: i32) -> (i32, i32) {
    %c0_i32 = arith.constant 0 : i32
    %c0_i32_0 = arith.constant 0 : i32
    %c0_i32_1 = arith.constant 0 : i32
    return %c0_i32, %c0_i32_0 : i32, i32
  }
  func.func @transform_3(%arg0: i32) -> (i32, i32, i32) {
    %c0_i32 = arith.constant 0 : i32
    %c0_i32_0 = arith.constant 0 : i32
    %c0_i32_1 = arith.constant 0 : i32
    %c0_i32_2 = arith.constant 0 : i32
    return %c0_i32, %c0_i32_0, %c0_i32_1 : i32, i32, i32
  }
  func.func @transform_4(%arg0: i32) -> (i32, i32, i32) {
    %c0_i32 = arith.constant 0 : i32
    %c0_i32_0 = arith.constant 0 : i32
    %c0_i32_1 = arith.constant 0 : i32
    %c0_i32_2 = arith.constant 0 : i32
    return %c0_i32, %c0_i32_0, %c0_i32_1 : i32, i32, i32
  }
  func.func @transform_5(%arg0: i32) -> (i32, i32, i32, i32) {
    %c0_i32 = arith.constant 0 : i32
    %c0_i32_0 = arith.constant 0 : i32
    %c0_i32_1 = arith.constant 0 : i32
    %c0_i32_2 = arith.constant 0 : i32
    %c0_i32_3 = arith.constant 0 : i32
    return %c0_i32, %c0_i32_0, %c0_i32_1, %c0_i32_2 : i32, i32, i32, i32
  }
  func.func @transform_6(%arg0: i32) -> (i32, i32, i32) {
    %c0_i32 = arith.constant 0 : i32
    %c0_i32_0 = arith.constant 0 : i32
    %c0_i32_1 = arith.constant 0 : i32
    %c0_i32_2 = arith.constant 0 : i32
    return %c0_i32, %c0_i32_0, %c0_i32_1 : i32, i32, i32
  }
  func.func @transform_7(%arg0: i32) -> (i32, i32, i32) {
    %c0_i32 = arith.constant 0 : i32
    %c0_i32_0 = arith.constant 0 : i32
    %c0_i32_1 = arith.constant 0 : i32
    %c0_i32_2 = arith.constant 0 : i32
    return %c0_i32, %c0_i32_0, %c0_i32_1 : i32, i32, i32
  }
  func.func @transform_8(%arg0: i32) -> (i32, i32, i32) {
    %c0_i32 = arith.constant 0 : i32
    %c0_i32_0 = arith.constant 0 : i32
    %c0_i32_1 = arith.constant 0 : i32
    %c0_i32_2 = arith.constant 0 : i32
    return %c0_i32, %c0_i32_0, %c0_i32_1 : i32, i32, i32
  }
  func.func @transform_9(%arg0: i32) -> (i32, i32, i32) {
    %c0_i32 = arith.constant 0 : i32
    %c0_i32_0 = arith.constant 0 : i32
    %c0_i32_1 = arith.constant 0 : i32
    %c0_i32_2 = arith.constant 0 : i32
    return %c0_i32, %c0_i32_0, %c0_i32_1 : i32, i32, i32
  }
  func.func @transform_10(%arg0: i32) -> (i32, i32, i32) {
    %c0_i32 = arith.constant 0 : i32
    %c0_i32_0 = arith.constant 0 : i32
    %c0_i32_1 = arith.constant 0 : i32
    %c0_i32_2 = arith.constant 0 : i32
    return %c0_i32, %c0_i32_0, %c0_i32_1 : i32, i32, i32
  }
  func.func @transform_11(%arg0: i32) -> (i32, i32, i32, i32) {
    %c0_i32 = arith.constant 0 : i32
    %c0_i32_0 = arith.constant 0 : i32
    %c0_i32_1 = arith.constant 0 : i32
    %c0_i32_2 = arith.constant 0 : i32
    return %c0_i32, %arg0, %c0_i32_0, %c0_i32_1 : i32, i32, i32, i32
  }
}

</mosaic_0001>

<bundles_post_ra>
// kernel: _lambda_.1
= control target key start
LH: loop header
LB: loop body
LE: loop exit
PB: predicated region body
PF: predicated region fallthrough
CT: control target
= control target key end

     0   :  { %s5410_s0 = inlined_call_operand.vmem [shape: f32[2,8,256], index: 0, kind: input, shape index: {}]   ;;  %s5411_s1 = inlined_call_operand.hbm [shape: f32[8,8], index: 1, kind: input, shape index: {}]   ;;  %s5412_s2 = inlined_call_operand.hbm [shape: f32[8,1], index: 2, kind: input, shape index: {}]   ;;  %s5413_s3 = inlined_call_operand.hbm [shape: f32[2,8,8], index: 3, kind: input, shape index: {}]   ;;  %s5414_s4 = inlined_call_operand.vmem [shape: f32[2,8,1], index: 4, kind: input, shape index: {}]   ;;  %s5415_s5 = inlined_call_operand.hbm [shape: f32[9,3,8,8], index: 5, kind: input, shape index: {}]   ;;  %s5416_s6 = inlined_call_operand.hbm [shape: f32[9,8,1], index: 6, kind: input, shape index: {}]   ;;  %s5417_s7 = inlined_call_operand.hbm [shape: f32[9,8,8], index: 7, kind: input, shape index: {}]   ;;  %s5418_s8 = inlined_call_operand.vmem [shape: f32[9,8,1], index: 8, kind: input, shape index: {}]   ;;  %s5419_s9 = inlined_call_operand.hbm [shape: f32[3,8,8], index: 9, kind: input, shape index: {}]   ;;  %s5420_s10 = inlined_call_operand.hbm [shape: f32[3,8,1], index: 10, kind: input, shape index: {}]   ;;  %s5421_s11 = inlined_call_operand.vmem [shape: f32[3,2,8,256], index: 11, kind: output, shape index: {}]  }
   0x1   :  { %5424 = sst [smem:[#allocation22_spill]] %s5412_s2 }
   0x2   :  { %16 = vsyncpa [#allocation4], 0 }
   0x3   :  { %17 = vsyncpa [#allocation6], 0 }
   0x4   :  { %18 = vsyncpa [#allocation9], 0 }
   0x5   :  { %19 = vsyncpa [#allocation12], 0 }
   0x6   :  { %20 = vsyncpa [#allocation15], 0  ;;  %s4951_s17 = smov 0   ;;  %s4953_s18 = smov 0  }
   0x7   :  { %s4955_s19 = smov 0  }
   0x8 LB: > { %s4964_s20 = sadd.s32 4294967295, %s4871_s19   ;;  %s4966_s21 = sadd.s32 1, %s4871_s19   ;;  %s4871_s19 = sphi %s4955_s19, %s5444_s19   ;;  %s4867_s18 = sphi %s4953_s18, %s5443_s18   ;;  %s4863_s17 = sphi %s4951_s17, %s5442_s17  }
   0x9   : > { %s266_s22 = ssub.s32 %s4871_s19, %s4966_s21  ;;  %s269_s23 = sadd.s32 1, %s4867_s18 }
   0xa   : > { %p267_p0 = scmp.eq.s32.totalorder %s266_s22, 0  ;;  %p279_p1 = scmp.ne.s32.totalorder %s4867_s18, %s4863_s17 }
   0xb   : > { %p280_p2 = scmp.eq.s32.totalorder %s4964_s20, 1  ;;  %p4421_p3 = scmp.ge.s32.totalorder %s4871_s19, 1 }
   0xc   : > { %s4974_s24 = scalar_select %p267_p0, %s4867_s18, %s269_s23  }
   0xd   : > { %p4976_p4 = por %p280_p2, %p279_p1  ;;  %p293_p5 = scmp.lt.s32.totalorder %s4871_s19, 3 }
   0xe   : > { %p5422_p6 = scmp.eq.s32.totalorder %s4964_s20, 0  ;;  %s4873_s27 = smov [#allocation5]  }
   0xf   : > { %s5425_s25 = scalar_select %p4976_p4, 1, 0 }
  0x10   : > { %p4981_p7 = pnand %p4421_p3, %p293_p5  ;;  %s317_s28 = sshll.u32 %s4873_s27, 4  ;;  %s318_s28 = int_to_ptr.vmem [resolvable:$true] %s317_s28 }
  0x11   : > { %s4874_s30 = smov [#allocation8]   ;;  %s4875_s13 = smov [#allocation11]  }
  0x12   : > { %s5426_s26 = scalar_select %p4981_p7, 1, 0 }
  0x13   : > { %p4536_p8 = pneg %p4981_p7  ;;  %s343_s12 = sshll.u32 %s4874_s30, 4  ;;  %s344_s12 = int_to_ptr.vmem [resolvable:$true] %s343_s12 }
  0x14   : > { %s369_s14 = sshll.u32 %s4875_s13, 4  ;;  %s4632_s16 = scalar_lea.vmem %s318_s28, 128  ;;  %s370_s14 = int_to_ptr.vmem [resolvable:$true] %s369_s14 }
  0x15   : > { %p4989_p9 = pnand %p5422_p6, %p4536_p8  ;;  %p4633_p11 = scmp.ne.s32.totalorder %s318_s28, %s4632_s16 }
  0x16   : > { %p4640_p0 = scmp.lt.s32.totalorder %s318_s28, %s318_s28  ;;  %p4641_p1 = scmp.lt.s32.totalorder %s4632_s16, %s4632_s16 }
  0x17   : > { %p4995_p10 = pneg %p4989_p9 }
  0x18   : > { %p4642_p2 = por %p4641_p1, %p4640_p0 }
  0x19   : > { %p4635_p12 = pnand %p4633_p11, %p4995_p10 }
  0x1b   : > { %p4636_p13 = pneg %p4635_p12 }
  0x1d   : > { %p4643_p3 = pnand %p4642_p2, %p4636_p13 }
  0x1f   : > { %4646 = shalt.err (!%p4643_p3)
}
  0x20   : > { %s5429_s2 = sld [smem:[#allocation22_spill]]  ;;  %s4658_s23 = scalar_lea.vmem %s344_s12, 3456 }
  0x21   : > { %p4659_p5 = scmp.ne.s32.totalorder %s344_s12, %s4658_s23  ;;  %p4666_p4 = scmp.lt.s32.totalorder %s344_s12, %s344_s12 }
  0x22   : > { %p4667_p11 = scmp.lt.s32.totalorder %s4658_s23, %s4658_s23 }
  0x23   : > { %p4661_p8 = pnand %p4659_p5, %p4995_p10 }
  0x24   : > { %p4668_p12 = por %p4667_p11, %p4666_p4 }
  0x25   : > { %p4662_p6 = pneg %p4661_p8 }
  0x26   : > { %4542 = dma.hbm_to_vmem [thread:$0]  (!%p4989_p9), %s5429_s2, 128, %s318_s28, [#allocation6]  }
  0x27   : > { %p4669_p7 = pnand %p4668_p12, %p4662_p6 }
  0x29   : > { %4672 = shalt.err (!%p4669_p7)
}
  0x2a   : > { %s4876_s27 = smov 128   ;;  %s4877_s30 = smov 8  }
  0x2b   : > { %4548 = dma.hbm_to_vmem [thread:$0]  (!%p4989_p9), %s5415_s5, 3456, %s344_s12, [#allocation9], %s4876_s27, %s4876_s27, %s4877_s30  }
  0x2c   : > { %s4684_s16 = scalar_lea.vmem %s370_s14, 1152  ;;  %p4692_p6 = scmp.lt.s32.totalorder %s370_s14, %s370_s14 }
  0x2d   : > { %p4685_p13 = scmp.ne.s32.totalorder %s370_s14, %s4684_s16  ;;  %p4693_p7 = scmp.lt.s32.totalorder %s4684_s16, %s4684_s16 }
  0x2f   : > { %p4687_p0 = pnand %p4685_p13, %p4995_p10  ;;  %p4694_p1 = por %p4693_p7, %p4692_p6 }
  0x31   : > { %p4688_p4 = pneg %p4687_p0 }
  0x33   : > { %p4695_p2 = pnand %p4694_p1, %p4688_p4 }
  0x35   : > { %4698 = shalt.err (!%p4695_p2)
}
  0x36   : > { %4554 = dma.hbm_to_vmem [thread:$0]  (!%p4989_p9), %s5417_s7, 1152, %s370_s14, [#allocation12], %s4876_s27, %s4876_s27, %s4877_s30  }
  0x37   : > { %s4878_s12 = smov [#allocation3]   ;;  %s4879_s13 = smov [#allocation7]  }
  0x38   : > { %s306_s23 = sshll.u32 %s4878_s12, 4  ;;  %s327_s28 = sshll.u32 %s4879_s13, 4  ;;  %s307_s23 = int_to_ptr.vmem [resolvable:$true] %s306_s23  ;;  %s328_s28 = int_to_ptr.vmem [resolvable:$true] %s327_s28 }
  0x39   : > { %s4710_s2 = scalar_lea.vmem %s307_s23, 128  ;;  %p4718_p11 = scmp.lt.s32.totalorder %s307_s23, %s307_s23 }
  0x3a   : > { %p4711_p3 = scmp.ne.s32.totalorder %s307_s23, %s4710_s2  ;;  %p4719_p12 = scmp.lt.s32.totalorder %s4710_s2, %s4710_s2 }
  0x3c   : > { %p4713_p5 = pnand %p4711_p3, %p4995_p10  ;;  %p4720_p13 = por %p4719_p12, %p4718_p11 }
  0x3e   : > { %p4714_p8 = pneg %p4713_p5 }
  0x40   : > { %p4721_p0 = pnand %p4720_p13, %p4714_p8 }
  0x42   : > { %4724 = shalt.err (!%p4721_p0)
}
  0x43   : > { %4539 = dma.hbm_to_vmem [thread:$0]  (!%p4989_p9), %s5411_s1, 128, %s307_s23, [#allocation4]  }
  0x44   : > { %s4736_s14 = scalar_lea.vmem %s328_s28, 256  ;;  %p4744_p1 = scmp.lt.s32.totalorder %s328_s28, %s328_s28 }
  0x45   : > { %p4737_p4 = scmp.ne.s32.totalorder %s328_s28, %s4736_s14  ;;  %p4745_p2 = scmp.lt.s32.totalorder %s4736_s14, %s4736_s14 }
  0x47   : > { %p4739_p6 = pnand %p4737_p4, %p4995_p10  ;;  %p4746_p3 = por %p4745_p2, %p4744_p1 }
  0x49   : > { %p4740_p7 = pneg %p4739_p6 }
  0x4b   : > { %p4747_p5 = pnand %p4746_p3, %p4740_p7 }
  0x4d   : > { %4750 = shalt.err (!%p4747_p5)
}
  0x4e   : > { %4545 = dma.hbm_to_vmem [thread:$0]  (!%p4989_p9), %s5413_s3, 256, %s328_s28, [#allocation6], %s4876_s27, %s4876_s27, %s4877_s30  }
  0x4f   : > { %s4880_s12 = smov [#allocation10]   ;;  %s4881_s13 = smov [#allocation13]  }
  0x50   : > { %s356_s23 = sshll.u32 %s4880_s12, 4  ;;  %s385_s16 = sshll.u32 %s4881_s13, 4  ;;  %s357_s23 = int_to_ptr.vmem [resolvable:$true] %s356_s23  ;;  %s386_s16 = int_to_ptr.vmem [resolvable:$true] %s385_s16 }
  0x51   : > { %s4762_s19 = scalar_lea.vmem %s357_s23, 1152  ;;  %p4770_p13 = scmp.lt.s32.totalorder %s357_s23, %s357_s23 }
  0x52   : > { %p4763_p8 = scmp.ne.s32.totalorder %s357_s23, %s4762_s19  ;;  %p4771_p0 = scmp.lt.s32.totalorder %s4762_s19, %s4762_s19 }
  0x54   : > { %p4765_p11 = pnand %p4763_p8, %p4995_p10  ;;  %p4772_p4 = por %p4771_p0, %p4770_p13 }
  0x56   : > { %p4766_p12 = pneg %p4765_p11 }
  0x58   : > { %p4773_p6 = pnand %p4772_p4, %p4766_p12 }
  0x5a   : > { %4776 = shalt.err (!%p4773_p6)
}
  0x5b   : > { %4551 = dma.hbm_to_vmem [thread:$0]  (!%p4989_p9), %s5416_s6, 1152, %s357_s23, [#allocation9], %s4876_s27, %s4876_s27, %s4877_s30  }
  0x5c   : > { %s4788_s2 = scalar_lea.vmem %s386_s16, 384  ;;  %p4796_p3 = scmp.lt.s32.totalorder %s386_s16, %s386_s16 }
  0x5d   : > { %p4789_p7 = scmp.ne.s32.totalorder %s386_s16, %s4788_s2  ;;  %p4797_p5 = scmp.lt.s32.totalorder %s4788_s2, %s4788_s2 }
  0x5f   : > { %p4791_p1 = pnand %p4789_p7, %p4995_p10  ;;  %p4798_p8 = por %p4797_p5, %p4796_p3 }
  0x61   : > { %p4792_p2 = pneg %p4791_p1 }
  0x63   : > { %p4799_p11 = pnand %p4798_p8, %p4792_p2 }
  0x65   : > { %4802 = shalt.err (!%p4799_p11)
}
  0x66   : > { %4557 = dma.hbm_to_vmem [thread:$0]  (!%p4989_p9), %s5419_s9, 384, %s386_s16, [#allocation12], %s4876_s27, %s4876_s27, %s4877_s30  }
  0x67   : > { %s4882_s23 = smov [#allocation14]  }
  0x68   : > { %s398_s13 = sshll.u32 %s4882_s23, 4  ;;  %s399_s13 = int_to_ptr.vmem [resolvable:$true] %s398_s13 }
  0x69   : > { %s4814_s19 = scalar_lea.vmem %s399_s13, 384  ;;  %p4822_p4 = scmp.lt.s32.totalorder %s399_s13, %s399_s13 }
  0x6a   : > { %p4815_p12 = scmp.ne.s32.totalorder %s399_s13, %s4814_s19  ;;  %p4823_p6 = scmp.lt.s32.totalorder %s4814_s19, %s4814_s19 }
  0x6c   : > { %p4817_p13 = pnand %p4815_p12, %p4995_p10  ;;  %p4824_p7 = por %p4823_p6, %p4822_p4 }
  0x6e   : > { %p4818_p0 = pneg %p4817_p13 }
  0x70   : > { %p4825_p1 = pnand %p4824_p7, %p4818_p0 }
  0x72   : > { %4828 = shalt.err (!%p4825_p1)
}
  0x73   : > { %4560 = dma.hbm_to_vmem [thread:$0]  (!%p4989_p9), %s5420_s10, 384, %s399_s13, [#allocation15], %s4876_s27, %s4876_s27, %s4877_s30  }
  0x74   : > { %p5430_p2 = scmp.ne.s32.totalorder %s5426_s26, 0 }
  0x75   : > { %p5431_p10 = scmp.eq.s32.totalorder (!%p5430_p2), %s4964_s20, 0 }
  0x76   : > { %422 = sbr.rel (%p5430_p2) target bundleno = 6088 (0x17c8), region = 64 }
  0x7b   : > { %4842 = dma.done.wait (%p5431_p10), [#allocation4], 128   ;;  %p5432_p3 = pmov %p5431_p10 }
  0x7d   : > { %4844 = vsyncadd (%p5432_p3), [#allocation4], 4294967168  ;;  %p5433_p5 = pmov %p5432_p3 }
  0x7e   : > { %p5434_p8 = pmov %p5432_p3 }
  0x7f   : > { %4846 = dma.done.wait (%p5433_p5), [#allocation6], 384  }
  0x80   : > { %4848 = vsyncadd (%p5434_p8), [#allocation6], 4294966912  ;;  %p5435_p11 = pmov %p5432_p3 }
  0x81   : > { %p5436_p9 = pmov %p5432_p3 }
  0x82   : > { %4850 = dma.done.wait (%p5435_p11), [#allocation9], 4608  }
  0x83   : > { %4852 = vsyncadd (%p5436_p9), [#allocation9], 4294962688  ;;  %p5437_p12 = pmov %p5432_p3 }
  0x84   : > { %p5438_p13 = pmov %p5432_p3 }
  0x85   : > { %4854 = dma.done.wait (%p5437_p12), [#allocation12], 1536  }
  0x86   : > { %4856 = vsyncadd (%p5438_p13), [#allocation12], 4294965760  ;;  %p5439_p0 = pmov %p5432_p3 }
  0x88   : > { %4858 = dma.done.wait (%p5439_p0), [#allocation15], 384   ;;  %p5440_p4 = pmov %p5439_p0 }
  0x89   : > { %p489_p6 = scmp.lt.s32.totalorder %s4964_s20, 1  ;;  %v4883_v0 = vmov 0.0   ;;  %v4884_v1 = vmov 0   ;;  %v498_v4 = vld [vmem:[#allocation3] sm:$0xff]  ;;  %vm505_vm0 = vcmask 64512   ;;  %v499_v5 = vld [vmem:[#allocation5] sm:$0xff] }
  0x8a   : > { %4860 = vsyncadd (%p5440_p4), [#allocation15], 4294966912  ;;  %573 = vmatprep.mubr.f32.mxu0 %v4883_v0  ;;  %4619 = vset.pattern.permute.xlu0 %v4884_v1  ;;  %s4885_s14 = smov 1   ;;  %v590_v11 = vld [vmem:[#allocation8 + $0x8] sm:$0xff]  ;;  %s4886_s2 = smov 127   ;;  %v845_v12 = vld [vmem:[#allocation10] sm:$0xff] }
  0x8b   : > { %s490_s26 = scalar_select %p489_p6, %s4964_s20, 1  ;;  %658 = vmatprep.mubr.f32.mxu1 %v4883_v0  ;;  %4620 = vset.pattern.permute.xlu1 %v4884_v1  ;;  %v856_v13 = vld [vmem:[%s5418_s8] sm:$0xff]  ;;  %vm674_vm1 = vcmask 7168   ;;  %v588_v18 = vld [vmem:[#allocation8] sm:$0xff]  ;;  %vm764_vm2 = vcmask 1039360   ;;  %v754_v24 = vld [vmem:[#allocation8 + $0x10] sm:$0xff] }
  0x8c   : > { %502 = vperm.xlu0 %4619, %v499_v5   ;;  %668 = vrot.lane.b32.xlu1 %v4883_v0, %s4885_s14  ;;  %v855_v41 = vld [vmem:[#allocation11] sm:$0xff]  ;;  %s4887_s23 = smov 2   ;;  %s4888_s13 = smov 126   ;;  %vm1033_vm3 = vcmask 15360   ;;  %v947_v56 = vld [vmem:[#allocation8 + $0x18] sm:$0xff]  ;;  %vm1123_vm4 = vcmask 1031168  }
  0x8d   : > { %s4501_s29 = sshll.u32 %s490_s26, 4  ;;  %v949_v49 = vld [vmem:[#allocation8 + $0x20] sm:$0xff]  ;;  %v1113_v62 = vld [vmem:[#allocation8 + $0x28] sm:$0xff]  ;;  %s4889_s16 = smov 4   ;;  %vm1395_vm5 = vcmask 31744   ;;  %vm1485_vm6 = vcmask 1014784  }
  0x8e   : > { %s493_s30 = scalar_lea.vmem %s5410_s0, %s4501_s29  ;;  %v1205_v50 = vld [vmem:[#allocation10 + $0x8] sm:$0xff]  ;;  %s4890_s26 = smov 124  }
  0x8f   : > { %v497_v2 = vld [vmem:[%s493_s30 + $0x8] sm:$0xff]  ;;  %v496_v3 = vld [vmem:[%s493_s30] sm:$0xff]  ;;  %s486_s22 = sand.u32 1, %s4863_s17   ;;  %p5441_p7 = scmp.ne.s32.totalorder %s5425_s25, 0 }
  0x90   : > { %539 = vmatprep.subr.mxu0 %v497_v2  ;;  %v4450_v51 = vld [vmem:[%s5418_s8 + $0x8] sm:$0xff]  ;;  %s4503_s12 = smul.u32 48, %s486_s22 }
  0x91   : > { %540 = vmatpush1.msra.mxu0 %v496_v3 }
  0x92   : > { %4442 = vmatmul.mubr.msk.f32.vlgmr.msra.gmra.mxu0 %vm505_vm0, %v498_v4  ;;  %s5217_s19 = scalar_lea.vmem [#allocation16], %s4503_s12 }
  0x93   : > { %746 = vmatprep.mubr.f32.mxu0 %v4883_v0 }
  0xfe   : > { %v669_v14 = vpop.permute.xlu1 %668 }
 0x107   : > { %v503_v6 = vpop.permute.xlu0 %502 }
 0x152   : > { %v575_v7 = vpop.f32.mrf.mxu0 }
 0x153   : > { %v5106_v8 = vadd.f32 %v575_v7, %v503_v6 }
 0x154   : > { %v577_v9 = vpop.f32.mrf.mxu0 }
 0x155   : > { %v5108_v10 = vadd.f32 %v577_v9, %v503_v6  ;;  %670 = vrot.lane.b32.xlu0 %v5106_v8, %s4885_s14 }
 0x157   : > { %672 = vrot.lane.b32.xlu1 %v5108_v10, %s4885_s14  ;;  %624 = vmatprep.subr.mxu1 %v5108_v10 }
 0x158   : > { %625 = vmatpush1.msra.mxu1 %v5106_v8 }
 0x159   : > { %760 = vrot.lane.b32.xlu0 %v5108_v10, %s4886_s2  ;;  %4443 = vmatmul.mubr.msk.f32.vlgmr.msra.gmra.mxu1 %vm505_vm0, %v590_v11 }
 0x15a   : > { %836 = vmatprep.mubr.f32.mxu1 %v4883_v0 }
 0x15b   : > { %762 = vrot.lane.b32.xlu1 %v4883_v0, %s4886_s2 }
 0x15d   : > { %758 = vrot.lane.b32.xlu0 %v5106_v8, %s4886_s2 }
 0x15f   : > { %848 = vperm.xlu1 %4620, %v845_v12  }
 0x161   : > { %859 = vperm.xlu0 %4619, %v856_v13  }
 0x163   : > { %1027 = vrot.lane.b32.xlu1 %v4883_v0, %s4887_s23 }
 0x1c7   : > { %v671_v15 = vpop.permute.xlu0 %670 }
 0x1c8   : > { %v675_v19 = vsel %vm674_vm1, %v669_v14, %v671_v15 }
 0x1c9   : > { %v673_v16 = vpop.permute.xlu1 %672 }
 0x1ca   : > { %v676_v17 = vsel %vm674_vm1, %v671_v15, %v673_v16  ;;  %v1216_v16 = vld [vmem:[#allocation11 + $0x8] sm:$0xff] }
 0x1cb   : > { %712 = vmatprep.subr.mxu0 %v676_v17  ;;  %v761_v20 = vpop.permute.xlu0 %760 }
 0x1cc   : > { %713 = vmatpush1.msra.mxu0 %v675_v19 }
 0x1cd   : > { %v763_v21 = vpop.permute.xlu1 %762  ;;  %4444 = vmatmul.mubr.msk.f32.vlgmr.msra.gmra.mxu0 %vm505_vm0, %v588_v18 }
 0x1ce   : > { %v766_v22 = vsel %vm764_vm2, %v761_v20, %v763_v21  ;;  %929 = vmatprep.mubr.f32.mxu0 %v4883_v0 }
 0x1cf   : > { %v759_v23 = vpop.permute.xlu0 %758  ;;  %802 = vmatprep.subr.mxu1 %v766_v22 }
 0x1d0   : > { %v765_v25 = vsel %vm764_vm2, %v759_v23, %v761_v20 }
 0x1d1   : > { %803 = vmatpush1.msra.mxu1 %v765_v25  ;;  %v1567_v25 = vld [vmem:[#allocation10 + $0x10] sm:$0xff] }
 0x1d2   : > { %4445 = vmatmul.mubr.msk.f32.vlgmr.msra.gmra.mxu1 %vm505_vm0, %v754_v24  ;;  %v1311_v24 = vld [vmem:[#allocation8 + $0x38] sm:$0xff] }
 0x1d3   : > { %1017 = vmatprep.mubr.f32.mxu1 %v4883_v0 }
 0x1da   : > { %v849_v34 = vpop.permute.xlu1 %848 }
 0x1dc   : > { %v860_v42 = vpop.permute.xlu0 %859 }
 0x1de   : > { %v1028_v52 = vpop.permute.xlu1 %1027 }
 0x219   : > { %v660_v26 = vpop.f32.mrf.mxu1 }
 0x21b   : > { %v662_v28 = vpop.f32.mrf.mxu1 }
 0x28d   : > { %v748_v27 = vpop.f32.mrf.mxu0 }
 0x28e   : > { %v749_v30 = vadd.f32 %v748_v27, %v660_v26  ;;  %v1667_v26 = vld [vmem:[#allocation14] sm:$0xff]  ;;  %v4455_v27 = vld [vmem:[%s5418_s8 + $0x10] sm:$0xff] }
 0x28f   : > { %v750_v29 = vpop.f32.mrf.mxu0 }
 0x290   : > { %v751_v32 = vadd.f32 %v750_v29, %v662_v28  ;;  %v1750_v28 = vld [vmem:[%s5414_s4] sm:$0xff] }
 0x292   : > { %v838_v31 = vpop.f32.mrf.mxu1 }
 0x293   : > { %v843_v33 = vadd.f32 %v838_v31, %v749_v30 }
 0x294   : > { %v840_v35 = vpop.f32.mrf.mxu1 }
 0x295   : > { %v844_v36 = vadd.f32 %v840_v35, %v751_v32  ;;  %v851_v37 = vadd.f32 %v849_v34, %v843_v33  ;;  %v1309_v33 = vld [vmem:[#allocation8 + $0x30] sm:$0xff] }
 0x297   : > { %v852_v38 = vadd.f32 %v849_v34, %v844_v36  ;;  %v853_v40 = vmax.f32 %v851_v37, 0.0 }
 0x299   : > { %v854_v39 = vmax.f32 %v852_v38, 0.0 }
 0x29b   : > { %895 = vmatprep.subr.mxu0 %v854_v39  ;;  %v1475_v39 = vld [vmem:[#allocation8 + $0x40] sm:$0xff] }
 0x29c   : > { %896 = vmatpush1.msra.mxu0 %v853_v40 }
 0x29d   : > { %4446 = vmatmul.mubr.msk.f32.vlgmr.msra.gmra.mxu0 %vm505_vm0, %v855_v41 }
 0x29e   : > { %1105 = vmatprep.mubr.f32.mxu0 %v4883_v0 }
 0x35d   : > { %v931_v43 = vpop.f32.mrf.mxu0 }
 0x35e   : > { %v932_v44 = vadd.f32 %v931_v43, %v860_v42 }
 0x35f   : > { %v933_v45 = vpop.f32.mrf.mxu0 }
 0x360   : > { %v5140_v46 = vadd.f32 %v932_v44, %v5106_v8  ;;  %v934_v47 = vadd.f32 %v933_v45, %v860_v42 }
 0x362   : > { %v5143_v48 = vadd.f32 %v934_v47, %v5108_v10  ;;  %1029 = vrot.lane.b32.xlu1 %v5140_v46, %s4887_s23 }
 0x364   : > { %1031 = vrot.lane.b32.xlu0 %v5143_v48, %s4887_s23  ;;  %983 = vmatprep.subr.mxu1 %v5143_v48 }
 0x365   : > { %984 = vmatpush1.msra.mxu1 %v5140_v46 }
 0x366   : > { %1121 = vrot.lane.b32.xlu1 %v4883_v0, %s4888_s13  ;;  %4447 = vmatmul.mubr.msk.f32.vlgmr.msra.gmra.mxu1 %vm505_vm0, %v949_v49 }
 0x367   : > { %1195 = vmatprep.mubr.f32.mxu1 %v4883_v0 }
 0x368   : > { %1119 = vrot.lane.b32.xlu0 %v5143_v48, %s4888_s13 }
 0x36a   : > { %1208 = vperm.xlu1 %4620, %v1205_v50  }
 0x36c   : > { %1117 = vrot.lane.b32.xlu0 %v5140_v46, %s4888_s13 }
 0x36e   : > { %1389 = vrot.lane.b32.xlu1 %v4883_v0, %s4889_s16 }
 0x370   : > { %1221 = vperm.xlu0 %4619, %v4450_v51  }
 0x3d4   : > { %v1030_v53 = vpop.permute.xlu1 %1029 }
 0x3d5   : > { %v1034_v57 = vsel %vm1033_vm3, %v1028_v52, %v1030_v53 }
 0x3d6   : > { %v1032_v54 = vpop.permute.xlu0 %1031 }
 0x3d7   : > { %v1035_v55 = vsel %vm1033_vm3, %v1030_v53, %v1032_v54 }
 0x3d8   : > { %1071 = vmatprep.subr.mxu0 %v1035_v55  ;;  %v1122_v58 = vpop.permute.xlu1 %1121 }
 0x3d9   : > { %1072 = vmatpush1.msra.mxu0 %v1034_v57 }
 0x3da   : > { %v1120_v59 = vpop.permute.xlu0 %1119  ;;  %4448 = vmatmul.mubr.msk.f32.vlgmr.msra.gmra.mxu0 %vm505_vm0, %v947_v56  ;;  %v1578_v56 = vld [vmem:[#allocation11 + $0x10] sm:$0xff] }
 0x3db   : > { %v1125_v60 = vsel %vm1123_vm4, %v1120_v59, %v1122_v58  ;;  %1291 = vmatprep.mubr.f32.mxu0 %v4883_v0 }
 0x3dc   : > { %1161 = vmatprep.subr.mxu1 %v1125_v60 }
 0x3de   : > { %v1118_v61 = vpop.permute.xlu0 %1117 }
 0x3df   : > { %v1124_v63 = vsel %vm1123_vm4, %v1118_v61, %v1120_v59 }
 0x3e0   : > { %1162 = vmatpush1.msra.mxu1 %v1124_v63 }
 0x3e1   : > { %4449 = vmatmul.mubr.msk.f32.vlgmr.msra.gmra.mxu1 %vm505_vm0, %v1113_v62 }
 0x3e2   : > { %1379 = vmatprep.mubr.f32.mxu1 %v4883_v0 }
 0x3e5   : > { %v1209_v10 = vpop.permute.xlu1 %1208 }
 0x3e9   : > { %v1390_v29 = vpop.permute.xlu1 %1389 }
 0x3eb   : > { %v1222_v17 = vpop.permute.xlu0 %1221 }
 0x426   : > { %v1019_v1 = vpop.f32.mrf.mxu1 }
 0x428   : > { %v1021_v3 = vpop.f32.mrf.mxu1 }
 0x49a   : > { %v1107_v2 = vpop.f32.mrf.mxu0 }
 0x49b   : > { %v1108_v5 = vadd.f32 %v1107_v2, %v1019_v1  ;;  %v1664_v1 = vld [vmem:[#allocation13] sm:$0xff] }
 0x49c   : > { %v1109_v4 = vpop.f32.mrf.mxu0 }
 0x49d   : > { %v1110_v7 = vadd.f32 %v1109_v4, %v1021_v3 }
 0x4a1   : > { %v1197_v6 = vpop.f32.mrf.mxu1 }
 0x4a2   : > { %v1202_v8 = vadd.f32 %v1197_v6, %v1108_v5 }
 0x4a3   : > { %v1199_v9 = vpop.f32.mrf.mxu1 }
 0x4a4   : > { %v1203_v11 = vadd.f32 %v1199_v9, %v1110_v7  ;;  %v1211_v12 = vadd.f32 %v1209_v10, %v1202_v8  ;;  %v1749_v7 = vld [vmem:[#allocation7] sm:$0xff] }
 0x4a6   : > { %v1212_v13 = vadd.f32 %v1209_v10, %v1203_v11  ;;  %v1213_v15 = vmax.f32 %v1211_v12, 0.0 }
 0x4a8   : > { %v1214_v14 = vmax.f32 %v1212_v13, 0.0  ;;  %v1841_v13 = vld [vmem:[#allocation8 + $0x50] sm:$0xff] }
 0x4aa   : > { %1257 = vmatprep.subr.mxu0 %v1214_v14  ;;  %v2095_v14 = vld [vmem:[#allocation10 + $0x18] sm:$0xff] }
 0x4ab   : > { %1258 = vmatpush1.msra.mxu0 %v1213_v15  ;;  %v4462_v15 = vld [vmem:[%s5418_s8 + $0x18] sm:$0xff] }
 0x4ac   : > { %4451 = vmatmul.mubr.msk.f32.vlgmr.msra.gmra.mxu0 %vm505_vm0, %v1216_v16 }
 0x4ad   : > { %1467 = vmatprep.mubr.f32.mxu0 %v4883_v0 }
 0x56c   : > { %v1293_v18 = vpop.f32.mrf.mxu0 }
 0x56d   : > { %v1294_v19 = vadd.f32 %v1293_v18, %v1222_v17 }
 0x56e   : > { %v1295_v20 = vpop.f32.mrf.mxu0 }
 0x56f   : > { %v5175_v21 = vadd.f32 %v1294_v19, %v5140_v46  ;;  %v1296_v22 = vadd.f32 %v1295_v20, %v1222_v17  ;;  %v1839_v20 = vld [vmem:[#allocation8 + $0x48] sm:$0xff] }
 0x571   : > { %v5178_v23 = vadd.f32 %v1296_v22, %v5143_v48  ;;  %1391 = vrot.lane.b32.xlu1 %v5175_v21, %s4889_s16 }
 0x573   : > { %1393 = vrot.lane.b32.xlu0 %v5178_v23, %s4889_s16  ;;  %1345 = vmatprep.subr.mxu1 %v5178_v23 }
 0x574   : > { %1346 = vmatpush1.msra.mxu1 %v5175_v21 }
 0x575   : > { %1483 = vrot.lane.b32.xlu1 %v4883_v0, %s4890_s26  ;;  %4452 = vmatmul.mubr.msk.f32.vlgmr.msra.gmra.mxu1 %vm505_vm0, %v1311_v24 }
 0x576   : > { %1557 = vmatprep.mubr.f32.mxu1 %v4883_v0 }
 0x577   : > { %1481 = vrot.lane.b32.xlu0 %v5178_v23, %s4890_s26 }
 0x579   : > { %1570 = vperm.xlu1 %4620, %v1567_v25  }
 0x57b   : > { %1479 = vrot.lane.b32.xlu0 %v5175_v21, %s4890_s26 }
 0x57d   : > { %1670 = vperm.xlu1 %4620, %v1667_v26   ;;  %v2004_v26 = vld [vmem:[#allocation8 + $0x58] sm:$0xff] }
 0x57f   : > { %1583 = vperm.xlu0 %4619, %v4455_v27  }
 0x581   : > { %1919 = vrot.lane.b32.xlu1 %v4883_v0, %s4885_s14 }
 0x583   : > { %1753 = vperm.xlu0 %4619, %v1750_v28  }
 0x5e3   : > { %v1392_v30 = vpop.permute.xlu1 %1391 }
 0x5e4   : > { %v1396_v34 = vsel %vm1395_vm5, %v1390_v29, %v1392_v30 }
 0x5e5   : > { %v1394_v31 = vpop.permute.xlu0 %1393 }
 0x5e6   : > { %v1397_v32 = vsel %vm1395_vm5, %v1392_v30, %v1394_v31 }
 0x5e7   : > { %1433 = vmatprep.subr.mxu0 %v1397_v32  ;;  %v1484_v35 = vpop.permute.xlu1 %1483 }
 0x5e8   : > { %1434 = vmatpush1.msra.mxu0 %v1396_v34 }
 0x5e9   : > { %v1482_v36 = vpop.permute.xlu0 %1481  ;;  %4453 = vmatmul.mubr.msk.f32.vlgmr.msra.gmra.mxu0 %vm505_vm0, %v1309_v33 }
 0x5ea   : > { %v1487_v37 = vsel %vm1485_vm6, %v1482_v36, %v1484_v35  ;;  %1653 = vmatprep.mubr.f32.mxu0 %v4883_v0 }
 0x5eb   : > { %1523 = vmatprep.subr.mxu1 %v1487_v37 }
 0x5ed   : > { %v1480_v38 = vpop.permute.xlu0 %1479 }
 0x5ee   : > { %v1486_v40 = vsel %vm1485_vm6, %v1480_v38, %v1482_v36 }
 0x5ef   : > { %1524 = vmatpush1.msra.mxu1 %v1486_v40 }
 0x5f0   : > { %4454 = vmatmul.mubr.msk.f32.vlgmr.msra.gmra.mxu1 %vm505_vm0, %v1475_v39 }
 0x5f1   : > { %1740 = vmatprep.mubr.f32.mxu1 %v4883_v0 }
 0x5f4   : > { %v1571_v50 = vpop.permute.xlu1 %1570 }
 0x5f8   : > { %v1671_v2 = vpop.permute.xlu1 %1670 }
 0x5fa   : > { %v1584_v58 = vpop.permute.xlu0 %1583 }
 0x5fc   : > { %v1920_v16 = vpop.permute.xlu1 %1919 }
 0x5fe   : > { %v1754_v8 = vpop.permute.xlu0 %1753 }
 0x635   : > { %v1381_v41 = vpop.f32.mrf.mxu1 }
 0x637   : > { %v1383_v43 = vpop.f32.mrf.mxu1 }
 0x6a9   : > { %v1469_v42 = vpop.f32.mrf.mxu0 }
 0x6aa   : > { %v1470_v45 = vadd.f32 %v1469_v42, %v1381_v41 }
 0x6ab   : > { %v1471_v44 = vpop.f32.mrf.mxu0 }
 0x6ac   : > { %v1472_v47 = vadd.f32 %v1471_v44, %v1383_v43  ;;  %v2106_v43 = vld [vmem:[#allocation11 + $0x18] sm:$0xff] }
 0x6b0   : > { %v1559_v46 = vpop.f32.mrf.mxu1 }
 0x6b1   : > { %v1564_v48 = vadd.f32 %v1559_v46, %v1470_v45 }
 0x6b2   : > { %v1561_v49 = vpop.f32.mrf.mxu1 }
 0x6b3   : > { %v1565_v51 = vadd.f32 %v1561_v49, %v1472_v47  ;;  %v1573_v52 = vadd.f32 %v1571_v50, %v1564_v48 }
 0x6b5   : > { %v1574_v53 = vadd.f32 %v1571_v50, %v1565_v51  ;;  %v1575_v55 = vmax.f32 %v1573_v52, 0.0  ;;  %v2201_v51 = vld [vmem:[#allocation8 + $0x68] sm:$0xff]  ;;  %v2455_v52 = vld [vmem:[#allocation10 + $0x20] sm:$0xff] }
 0x6b7   : > { %v1576_v54 = vmax.f32 %v1574_v53, 0.0  ;;  %v4467_v53 = vld [vmem:[%s5418_s8 + $0x20] sm:$0xff] }
 0x6b9   : > { %1619 = vmatprep.subr.mxu0 %v1576_v54 }
 0x6ba   : > { %1620 = vmatpush1.msra.mxu0 %v1575_v55 }
 0x6bb   : > { %4456 = vmatmul.mubr.msk.f32.vlgmr.msra.gmra.mxu0 %vm505_vm0, %v1578_v56 }
 0x6bc   : > { %1823 = vmatprep.mubr.f32.mxu0 %v4883_v0 }
 0x77b   : > { %v1655_v57 = vpop.f32.mrf.mxu0 }
 0x77c   : > { %v1656_v59 = vadd.f32 %v1655_v57, %v1584_v58 }
 0x77d   : > { %v1657_v60 = vpop.f32.mrf.mxu0 }
 0x77e   : > { %v1658_v61 = vadd.f32 %v1657_v60, %v1584_v58  ;;  %v1660_v63 = vadd.f32 %v1656_v59, %v5175_v21  ;;  %v2199_v58 = vld [vmem:[#allocation8 + $0x60] sm:$0xff] }
 0x780   : > { %v1661_v62 = vadd.f32 %v1658_v61, %v5178_v23 }
 0x782   : > { %1706 = vmatprep.subr.mxu1 %v1661_v62 }
 0x783   : > { %1707 = vmatpush1.msra.mxu1 %v1660_v63 }
 0x784   : > { %4457 = vmatmul.mubr.msk.f32.vlgmr.msra.gmra.mxu1 %vm505_vm0, %v1664_v1  ;;  %v2364_v1 = vld [vmem:[#allocation8 + $0x70] sm:$0xff] }
 0x785   : > { %1909 = vmatprep.mubr.f32.mxu1 %v4883_v0 }
 0x844   : > { %v1742_v3 = vpop.f32.mrf.mxu1 }
 0x845   : > { %v1743_v4 = vadd.f32 %v1742_v3, %v1671_v2 }
 0x846   : > { %v1744_v5 = vpop.f32.mrf.mxu1 }
 0x847   : > { %1747 = vst [vmem:[%s5217_s19] sm:$0xff] %v1743_v4  ;;  %v1745_v6 = vadd.f32 %v1744_v5, %v1671_v2 }
 0x849   : > { %1748 = vst [vmem:[%s5217_s19 + $0x8] sm:$0xff] %v1745_v6  ;;  %1789 = vmatprep.subr.mxu0 %v1745_v6 }
 0x84a   : > { %1790 = vmatpush1.msra.mxu0 %v1743_v4 }
 0x84b   : > { %4458 = vmatmul.mubr.msk.f32.vlgmr.msra.gmra.mxu0 %vm505_vm0, %v1749_v7 }
 0x84c   : > { %1996 = vmatprep.mubr.f32.mxu0 %v4883_v0 }
 0x90b   : > { %v1825_v9 = vpop.f32.mrf.mxu0 }
 0x90c   : > { %v1826_v10 = vadd.f32 %v1825_v9, %v1754_v8 }
 0x90d   : > { %v1827_v11 = vpop.f32.mrf.mxu0 }
 0x90e   : > { %v1828_v12 = vadd.f32 %v1827_v11, %v1754_v8  ;;  %1921 = vrot.lane.b32.xlu1 %v1826_v10, %s4885_s14 }
 0x910   : > { %1923 = vrot.lane.b32.xlu0 %v1828_v12, %s4885_s14  ;;  %1875 = vmatprep.subr.mxu1 %v1828_v12 }
 0x911   : > { %1876 = vmatpush1.msra.mxu1 %v1826_v10 }
 0x912   : > { %2012 = vrot.lane.b32.xlu1 %v4883_v0, %s4886_s2  ;;  %4459 = vmatmul.mubr.msk.f32.vlgmr.msra.gmra.mxu1 %vm505_vm0, %v1841_v13 }
 0x913   : > { %2085 = vmatprep.mubr.f32.mxu1 %v4883_v0 }
 0x914   : > { %2010 = vrot.lane.b32.xlu0 %v1828_v12, %s4886_s2 }
 0x916   : > { %2098 = vperm.xlu1 %4620, %v2095_v14  }
 0x918   : > { %2008 = vrot.lane.b32.xlu0 %v1826_v10, %s4886_s2 }
 0x91a   : > { %2279 = vrot.lane.b32.xlu1 %v4883_v0, %s4887_s23 }
 0x91c   : > { %2111 = vperm.xlu0 %4619, %v4462_v15  }
 0x980   : > { %v1922_v17 = vpop.permute.xlu1 %1921 }
 0x981   : > { %v1925_v21 = vsel %vm674_vm1, %v1920_v16, %v1922_v17 }
 0x982   : > { %v1924_v18 = vpop.permute.xlu0 %1923 }
 0x983   : > { %v1926_v19 = vsel %vm674_vm1, %v1922_v17, %v1924_v18  ;;  %v2466_v18 = vld [vmem:[#allocation11 + $0x20] sm:$0xff] }
 0x984   : > { %1962 = vmatprep.subr.mxu0 %v1926_v19  ;;  %v2013_v22 = vpop.permute.xlu1 %2012 }
 0x985   : > { %1963 = vmatpush1.msra.mxu0 %v1925_v21 }
 0x986   : > { %v2011_v23 = vpop.permute.xlu0 %2010  ;;  %4460 = vmatmul.mubr.msk.f32.vlgmr.msra.gmra.mxu0 %vm505_vm0, %v1839_v20 }
 0x987   : > { %v2015_v24 = vsel %vm764_vm2, %v2011_v23, %v2013_v22  ;;  %2181 = vmatprep.mubr.f32.mxu0 %v4883_v0 }
 0x988   : > { %2051 = vmatprep.subr.mxu1 %v2015_v24 }
 0x98a   : > { %v2009_v25 = vpop.permute.xlu0 %2008 }
 0x98b   : > { %v2014_v27 = vsel %vm764_vm2, %v2009_v25, %v2011_v23 }
 0x98c   : > { %2052 = vmatpush1.msra.mxu1 %v2014_v27  ;;  %v2815_v27 = vld [vmem:[#allocation10 + $0x28] sm:$0xff] }
 0x98d   : > { %4461 = vmatmul.mubr.msk.f32.vlgmr.msra.gmra.mxu1 %vm505_vm0, %v2004_v26  ;;  %v2561_v26 = vld [vmem:[#allocation8 + $0x80] sm:$0xff] }
 0x98e   : > { %2269 = vmatprep.mubr.f32.mxu1 %v4883_v0 }
 0x991   : > { %v2099_v37 = vpop.permute.xlu1 %2098 }
 0x995   : > { %v2280_v54 = vpop.permute.xlu1 %2279 }
 0x997   : > { %v2112_v44 = vpop.permute.xlu0 %2111 }
 0x9d2   : > { %v1911_v28 = vpop.f32.mrf.mxu1 }
 0x9d4   : > { %v1913_v30 = vpop.f32.mrf.mxu1 }
 0xa46   : > { %v1998_v29 = vpop.f32.mrf.mxu0 }
 0xa47   : > { %v1999_v32 = vadd.f32 %v1998_v29, %v1911_v28  ;;  %v2917_v28 = vld [vmem:[#allocation14 + $0x8] sm:$0xff]  ;;  %v4472_v29 = vld [vmem:[%s5418_s8 + $0x28] sm:$0xff] }
 0xa48   : > { %v2000_v31 = vpop.f32.mrf.mxu0 }
 0xa49   : > { %v2001_v34 = vadd.f32 %v2000_v31, %v1913_v30  ;;  %v4477_v30 = vld [vmem:[%s5414_s4 + $0x8] sm:$0xff] }
 0xa4d   : > { %v2087_v33 = vpop.f32.mrf.mxu1 }
 0xa4e   : > { %v2092_v35 = vadd.f32 %v2087_v33, %v1999_v32 }
 0xa4f   : > { %v2089_v36 = vpop.f32.mrf.mxu1 }
 0xa50   : > { %v2093_v38 = vadd.f32 %v2089_v36, %v2001_v34  ;;  %v2101_v39 = vadd.f32 %v2099_v37, %v2092_v35  ;;  %v2559_v35 = vld [vmem:[#allocation8 + $0x78] sm:$0xff] }
 0xa52   : > { %v2102_v40 = vadd.f32 %v2099_v37, %v2093_v38  ;;  %v2103_v42 = vmax.f32 %v2101_v39, 0.0 }
 0xa54   : > { %v2104_v41 = vmax.f32 %v2102_v40, 0.0 }
 0xa56   : > { %2147 = vmatprep.subr.mxu0 %v2104_v41  ;;  %v2724_v41 = vld [vmem:[#allocation8 + $0x88] sm:$0xff] }
 0xa57   : > { %2148 = vmatpush1.msra.mxu0 %v2103_v42 }
 0xa58   : > { %4463 = vmatmul.mubr.msk.f32.vlgmr.msra.gmra.mxu0 %vm505_vm0, %v2106_v43 }
 0xa59   : > { %2356 = vmatprep.mubr.f32.mxu0 %v4883_v0 }
 0xb18   : > { %v2183_v45 = vpop.f32.mrf.mxu0 }
 0xb19   : > { %v2184_v46 = vadd.f32 %v2183_v45, %v2112_v44 }
 0xb1a   : > { %v2185_v47 = vpop.f32.mrf.mxu0 }
 0xb1b   : > { %v2188_v48 = vadd.f32 %v2184_v46, %v1826_v10  ;;  %v2186_v49 = vadd.f32 %v2185_v47, %v2112_v44 }
 0xb1d   : > { %v2189_v50 = vadd.f32 %v2186_v49, %v1828_v12  ;;  %2281 = vrot.lane.b32.xlu1 %v2188_v48, %s4887_s23 }
 0xb1f   : > { %2283 = vrot.lane.b32.xlu0 %v2189_v50, %s4887_s23  ;;  %2235 = vmatprep.subr.mxu1 %v2189_v50 }
 0xb20   : > { %2236 = vmatpush1.msra.mxu1 %v2188_v48 }
 0xb21   : > { %2372 = vrot.lane.b32.xlu1 %v4883_v0, %s4888_s13  ;;  %4464 = vmatmul.mubr.msk.f32.vlgmr.msra.gmra.mxu1 %vm505_vm0, %v2201_v51 }
 0xb22   : > { %2445 = vmatprep.mubr.f32.mxu1 %v4883_v0 }
 0xb23   : > { %2370 = vrot.lane.b32.xlu0 %v2189_v50, %s4888_s13 }
 0xb25   : > { %2458 = vperm.xlu1 %4620, %v2455_v52  }
 0xb27   : > { %2368 = vrot.lane.b32.xlu0 %v2188_v48, %s4888_s13 }
 0xb29   : > { %2639 = vrot.lane.b32.xlu1 %v4883_v0, %s4889_s16 }
 0xb2b   : > { %2471 = vperm.xlu0 %4619, %v4467_v53  }
 0xb8f   : > { %v2282_v55 = vpop.permute.xlu1 %2281 }
 0xb90   : > { %v2285_v59 = vsel %vm1033_vm3, %v2280_v54, %v2282_v55 }
 0xb91   : > { %v2284_v56 = vpop.permute.xlu0 %2283 }
 0xb92   : > { %v2286_v57 = vsel %vm1033_vm3, %v2282_v55, %v2284_v56 }
 0xb93   : > { %2322 = vmatprep.subr.mxu0 %v2286_v57  ;;  %v2373_v60 = vpop.permute.xlu1 %2372 }
 0xb94   : > { %2323 = vmatpush1.msra.mxu0 %v2285_v59 }
 0xb95   : > { %v2371_v61 = vpop.permute.xlu0 %2370  ;;  %4465 = vmatmul.mubr.msk.f32.vlgmr.msra.gmra.mxu0 %vm505_vm0, %v2199_v58  ;;  %v2826_v58 = vld [vmem:[#allocation11 + $0x28] sm:$0xff] }
 0xb96   : > { %v2375_v62 = vsel %vm1123_vm4, %v2371_v61, %v2373_v60  ;;  %2541 = vmatprep.mubr.f32.mxu0 %v4883_v0 }
 0xb97   : > { %2411 = vmatprep.subr.mxu1 %v2375_v62 }
 0xb99   : > { %v2369_v63 = vpop.permute.xlu0 %2368 }
 0xb9a   : > { %v2374_v2 = vsel %vm1123_vm4, %v2369_v63, %v2371_v61 }
 0xb9b   : > { %2412 = vmatpush1.msra.mxu1 %v2374_v2 }
 0xb9c   : > { %4466 = vmatmul.mubr.msk.f32.vlgmr.msra.gmra.mxu1 %vm505_vm0, %v2364_v1 }
 0xb9d   : > { %2629 = vmatprep.mubr.f32.mxu1 %v4883_v0 }
 0xba0   : > { %v2459_v12 = vpop.permute.xlu1 %2458 }
 0xba4   : > { %v2640_v31 = vpop.permute.xlu1 %2639 }
 0xba6   : > { %v2472_v19 = vpop.permute.xlu0 %2471 }
 0xbe1   : > { %v2271_v3 = vpop.f32.mrf.mxu1 }
 0xbe3   : > { %v2273_v5 = vpop.f32.mrf.mxu1 }
 0xc55   : > { %v2358_v4 = vpop.f32.mrf.mxu0 }
 0xc56   : > { %v2359_v7 = vadd.f32 %v2358_v4, %v2271_v3  ;;  %v2913_v3 = vld [vmem:[#allocation13 + $0x8] sm:$0xff] }
 0xc57   : > { %v2360_v6 = vpop.f32.mrf.mxu0 }
 0xc58   : > { %v2361_v9 = vadd.f32 %v2360_v6, %v2273_v5 }
 0xc5c   : > { %v2447_v8 = vpop.f32.mrf.mxu1 }
 0xc5d   : > { %v2452_v10 = vadd.f32 %v2447_v8, %v2359_v7 }
 0xc5e   : > { %v2449_v11 = vpop.f32.mrf.mxu1 }
 0xc5f   : > { %v2453_v13 = vadd.f32 %v2449_v11, %v2361_v9  ;;  %v2461_v14 = vadd.f32 %v2459_v12, %v2452_v10  ;;  %v3001_v9 = vld [vmem:[#allocation7 + $0x8] sm:$0xff] }
 0xc61   : > { %v2462_v15 = vadd.f32 %v2459_v12, %v2453_v13  ;;  %v2463_v17 = vmax.f32 %v2461_v14, 0.0 }
 0xc63   : > { %v2464_v16 = vmax.f32 %v2462_v15, 0.0  ;;  %v3094_v15 = vld [vmem:[#allocation8 + $0x98] sm:$0xff] }
 0xc65   : > { %2507 = vmatprep.subr.mxu0 %v2464_v16  ;;  %v3348_v16 = vld [vmem:[#allocation10 + $0x30] sm:$0xff] }
 0xc66   : > { %2508 = vmatpush1.msra.mxu0 %v2463_v17  ;;  %v4482_v17 = vld [vmem:[%s5418_s8 + $0x30] sm:$0xff] }
 0xc67   : > { %4468 = vmatmul.mubr.msk.f32.vlgmr.msra.gmra.mxu0 %vm505_vm0, %v2466_v18 }
 0xc68   : > { %2716 = vmatprep.mubr.f32.mxu0 %v4883_v0 }
 0xd27   : > { %v2543_v20 = vpop.f32.mrf.mxu0 }
 0xd28   : > { %v2544_v21 = vadd.f32 %v2543_v20, %v2472_v19 }
 0xd29   : > { %v2545_v22 = vpop.f32.mrf.mxu0 }
 0xd2a   : > { %v5269_v23 = vadd.f32 %v2544_v21, %v2188_v48  ;;  %v2546_v24 = vadd.f32 %v2545_v22, %v2472_v19  ;;  %v3092_v22 = vld [vmem:[#allocation8 + $0x90] sm:$0xff] }
 0xd2c   : > { %v5271_v25 = vadd.f32 %v2546_v24, %v2189_v50  ;;  %2641 = vrot.lane.b32.xlu1 %v5269_v23, %s4889_s16 }
 0xd2e   : > { %2643 = vrot.lane.b32.xlu0 %v5271_v25, %s4889_s16  ;;  %2595 = vmatprep.subr.mxu1 %v5271_v25 }
 0xd2f   : > { %2596 = vmatpush1.msra.mxu1 %v5269_v23 }
 0xd30   : > { %2732 = vrot.lane.b32.xlu1 %v4883_v0, %s4890_s26  ;;  %4469 = vmatmul.mubr.msk.f32.vlgmr.msra.gmra.mxu1 %vm505_vm0, %v2561_v26 }
 0xd31   : > { %2805 = vmatprep.mubr.f32.mxu1 %v4883_v0 }
 0xd32   : > { %2730 = vrot.lane.b32.xlu0 %v5271_v25, %s4890_s26 }
 0xd34   : > { %2818 = vperm.xlu1 %4620, %v2815_v27  }
 0xd36   : > { %2728 = vrot.lane.b32.xlu0 %v5269_v23, %s4890_s26 }
 0xd38   : > { %2920 = vperm.xlu1 %4620, %v2917_v28   ;;  %v3257_v28 = vld [vmem:[#allocation8 + $0xa0] sm:$0xff] }
 0xd3a   : > { %2831 = vperm.xlu0 %4619, %v4472_v29  }
 0xd3c   : > { %3172 = vrot.lane.b32.xlu1 %v4883_v0, %s4885_s14 }
 0xd3e   : > { %3006 = vperm.xlu0 %4619, %v4477_v30  }
 0xd9e   : > { %v2642_v32 = vpop.permute.xlu1 %2641 }
 0xd9f   : > { %v2645_v36 = vsel %vm1395_vm5, %v2640_v31, %v2642_v32 }
 0xda0   : > { %v2644_v33 = vpop.permute.xlu0 %2643 }
 0xda1   : > { %v2646_v34 = vsel %vm1395_vm5, %v2642_v32, %v2644_v33 }
 0xda2   : > { %2682 = vmatprep.subr.mxu0 %v2646_v34  ;;  %v2733_v37 = vpop.permute.xlu1 %2732 }
 0xda3   : > { %2683 = vmatpush1.msra.mxu0 %v2645_v36 }
 0xda4   : > { %v2731_v38 = vpop.permute.xlu0 %2730  ;;  %4470 = vmatmul.mubr.msk.f32.vlgmr.msra.gmra.mxu0 %vm505_vm0, %v2559_v35 }
 0xda5   : > { %v2735_v39 = vsel %vm1485_vm6, %v2731_v38, %v2733_v37  ;;  %2901 = vmatprep.mubr.f32.mxu0 %v4883_v0 }
 0xda6   : > { %2771 = vmatprep.subr.mxu1 %v2735_v39 }
 0xda8   : > { %v2729_v40 = vpop.permute.xlu0 %2728 }
 0xda9   : > { %v2734_v42 = vsel %vm1485_vm6, %v2729_v40, %v2731_v38 }
 0xdaa   : > { %2772 = vmatpush1.msra.mxu1 %v2734_v42 }
 0xdab   : > { %4471 = vmatmul.mubr.msk.f32.vlgmr.msra.gmra.mxu1 %vm505_vm0, %v2724_v41 }
 0xdac   : > { %2990 = vmatprep.mubr.f32.mxu1 %v4883_v0 }
 0xdaf   : > { %v2819_v52 = vpop.permute.xlu1 %2818 }
 0xdb3   : > { %v2921_v4 = vpop.permute.xlu1 %2920 }
 0xdb5   : > { %v2832_v60 = vpop.permute.xlu0 %2831 }
 0xdb7   : > { %v3173_v18 = vpop.permute.xlu1 %3172 }
 0xdb9   : > { %v3007_v10 = vpop.permute.xlu0 %3006 }
 0xdf0   : > { %v2631_v43 = vpop.f32.mrf.mxu1 }
 0xdf2   : > { %v2633_v45 = vpop.f32.mrf.mxu1 }
 0xe64   : > { %v2718_v44 = vpop.f32.mrf.mxu0 }
 0xe65   : > { %v2719_v47 = vadd.f32 %v2718_v44, %v2631_v43 }
 0xe66   : > { %v2720_v46 = vpop.f32.mrf.mxu0 }
 0xe67   : > { %v2721_v49 = vadd.f32 %v2720_v46, %v2633_v45  ;;  %v3359_v45 = vld [vmem:[#allocation11 + $0x30] sm:$0xff] }
 0xe6b   : > { %v2807_v48 = vpop.f32.mrf.mxu1 }
 0xe6c   : > { %v2812_v50 = vadd.f32 %v2807_v48, %v2719_v47 }
 0xe6d   : > { %v2809_v51 = vpop.f32.mrf.mxu1 }
 0xe6e   : > { %v2813_v53 = vadd.f32 %v2809_v51, %v2721_v49  ;;  %v2821_v54 = vadd.f32 %v2819_v52, %v2812_v50 }
 0xe70   : > { %v2822_v55 = vadd.f32 %v2819_v52, %v2813_v53  ;;  %v2823_v57 = vmax.f32 %v2821_v54, 0.0  ;;  %v3454_v53 = vld [vmem:[#allocation8 + $0xb0] sm:$0xff] }
 0xe71   : > { %v3708_v54 = vld [vmem:[#allocation10 + $0x38] sm:$0xff] }
 0xe72   : > { %v2824_v56 = vmax.f32 %v2822_v55, 0.0  ;;  %v4487_v55 = vld [vmem:[%s5418_s8 + $0x38] sm:$0xff] }
 0xe74   : > { %2867 = vmatprep.subr.mxu0 %v2824_v56 }
 0xe75   : > { %2868 = vmatpush1.msra.mxu0 %v2823_v57 }
 0xe76   : > { %4473 = vmatmul.mubr.msk.f32.vlgmr.msra.gmra.mxu0 %vm505_vm0, %v2826_v58 }
 0xe77   : > { %3076 = vmatprep.mubr.f32.mxu0 %v4883_v0 }
 0xf36   : > { %v2903_v59 = vpop.f32.mrf.mxu0 }
 0xf37   : > { %v2904_v61 = vadd.f32 %v2903_v59, %v2832_v60 }
 0xf38   : > { %v2905_v62 = vpop.f32.mrf.mxu0 }
 0xf39   : > { %v2906_v63 = vadd.f32 %v2905_v62, %v2832_v60  ;;  %v2908_v2 = vadd.f32 %v2904_v61, %v5269_v23  ;;  %v3452_v60 = vld [vmem:[#allocation8 + $0xa8] sm:$0xff] }
 0xf3b   : > { %v2909_v1 = vadd.f32 %v2906_v63, %v5271_v25 }
 0xf3d   : > { %2956 = vmatprep.subr.mxu1 %v2909_v1 }
 0xf3e   : > { %2957 = vmatpush1.msra.mxu1 %v2908_v2 }
 0xf3f   : > { %4474 = vmatmul.mubr.msk.f32.vlgmr.msra.gmra.mxu1 %vm505_vm0, %v2913_v3  ;;  %v3617_v3 = vld [vmem:[#allocation8 + $0xb8] sm:$0xff] }
 0xf40   : > { %3162 = vmatprep.mubr.f32.mxu1 %v4883_v0 }
 0xfff   : > { %v2992_v5 = vpop.f32.mrf.mxu1 }
0x1000   : > { %v2993_v6 = vadd.f32 %v2992_v5, %v2921_v4 }
0x1001   : > { %v2994_v7 = vpop.f32.mrf.mxu1 }
0x1002   : > { %4475 = vst [vmem:[%s5217_s19 + $0x10] sm:$0xff] %v2993_v6  ;;  %v2995_v8 = vadd.f32 %v2994_v7, %v2921_v4 }
0x1004   : > { %4476 = vst [vmem:[%s5217_s19 + $0x18] sm:$0xff] %v2995_v8  ;;  %3042 = vmatprep.subr.mxu0 %v2995_v8 }
0x1005   : > { %3043 = vmatpush1.msra.mxu0 %v2993_v6 }
0x1006   : > { %4478 = vmatmul.mubr.msk.f32.vlgmr.msra.gmra.mxu0 %vm505_vm0, %v3001_v9 }
0x1007   : > { %3249 = vmatprep.mubr.f32.mxu0 %v4883_v0 }
0x10c6   : > { %v3078_v11 = vpop.f32.mrf.mxu0 }
0x10c7   : > { %v3079_v12 = vadd.f32 %v3078_v11, %v3007_v10 }
0x10c8   : > { %v3080_v13 = vpop.f32.mrf.mxu0 }
0x10c9   : > { %v3081_v14 = vadd.f32 %v3080_v13, %v3007_v10  ;;  %3174 = vrot.lane.b32.xlu1 %v3079_v12, %s4885_s14 }
0x10cb   : > { %3176 = vrot.lane.b32.xlu0 %v3081_v14, %s4885_s14  ;;  %3128 = vmatprep.subr.mxu1 %v3081_v14 }
0x10cc   : > { %3129 = vmatpush1.msra.mxu1 %v3079_v12 }
0x10cd   : > { %3265 = vrot.lane.b32.xlu1 %v4883_v0, %s4886_s2  ;;  %4479 = vmatmul.mubr.msk.f32.vlgmr.msra.gmra.mxu1 %vm505_vm0, %v3094_v15 }
0x10ce   : > { %3338 = vmatprep.mubr.f32.mxu1 %v4883_v0 }
0x10cf   : > { %3263 = vrot.lane.b32.xlu0 %v3081_v14, %s4886_s2 }
0x10d1   : > { %3351 = vperm.xlu1 %4620, %v3348_v16  }
0x10d3   : > { %3261 = vrot.lane.b32.xlu0 %v3079_v12, %s4886_s2 }
0x10d5   : > { %3532 = vrot.lane.b32.xlu1 %v4883_v0, %s4887_s23 }
0x10d7   : > { %3364 = vperm.xlu0 %4619, %v4482_v17  }
0x113b   : > { %v3175_v19 = vpop.permute.xlu1 %3174 }
0x113c   : > { %v3178_v23 = vsel %vm674_vm1, %v3173_v18, %v3175_v19 }
0x113d   : > { %v3177_v20 = vpop.permute.xlu0 %3176 }
0x113e   : > { %v3179_v21 = vsel %vm674_vm1, %v3175_v19, %v3177_v20  ;;  %v3719_v20 = vld [vmem:[#allocation11 + $0x38] sm:$0xff] }
0x113f   : > { %3215 = vmatprep.subr.mxu0 %v3179_v21  ;;  %v3266_v24 = vpop.permute.xlu1 %3265 }
0x1140   : > { %3216 = vmatpush1.msra.mxu0 %v3178_v23 }
0x1141   : > { %v3264_v25 = vpop.permute.xlu0 %3263  ;;  %4480 = vmatmul.mubr.msk.f32.vlgmr.msra.gmra.mxu0 %vm505_vm0, %v3092_v22 }
0x1142   : > { %v3268_v26 = vsel %vm764_vm2, %v3264_v25, %v3266_v24  ;;  %3434 = vmatprep.mubr.f32.mxu0 %v4883_v0 }
0x1143   : > { %3304 = vmatprep.subr.mxu1 %v3268_v26 }
0x1145   : > { %v3262_v27 = vpop.permute.xlu0 %3261 }
0x1146   : > { %v3267_v29 = vsel %vm764_vm2, %v3262_v27, %v3264_v25 }
0x1147   : > { %3305 = vmatpush1.msra.mxu1 %v3267_v29  ;;  %v4068_v29 = vld [vmem:[#allocation10 + $0x40] sm:$0xff] }
0x1148   : > { %4481 = vmatmul.mubr.msk.f32.vlgmr.msra.gmra.mxu1 %vm505_vm0, %v3257_v28  ;;  %v3814_v28 = vld [vmem:[#allocation8 + $0xc8] sm:$0xff] }
0x1149   : > { %3522 = vmatprep.mubr.f32.mxu1 %v4883_v0 }
0x114c   : > { %v3352_v39 = vpop.permute.xlu1 %3351 }
0x1150   : > { %v3533_v56 = vpop.permute.xlu1 %3532 }
0x1152   : > { %v3365_v46 = vpop.permute.xlu0 %3364 }
0x118d   : > { %v3164_v30 = vpop.f32.mrf.mxu1 }
0x118f   : > { %v3166_v32 = vpop.f32.mrf.mxu1 }
0x1201   : > { %v3251_v31 = vpop.f32.mrf.mxu0 }
0x1202   : > { %v3252_v34 = vadd.f32 %v3251_v31, %v3164_v30  ;;  %v4170_v30 = vld [vmem:[#allocation14 + $0x10] sm:$0xff]  ;;  %v4492_v31 = vld [vmem:[%s5418_s8 + $0x40] sm:$0xff] }
0x1203   : > { %v3253_v33 = vpop.f32.mrf.mxu0 }
0x1204   : > { %v3254_v36 = vadd.f32 %v3253_v33, %v3166_v32 }
0x1208   : > { %v3340_v35 = vpop.f32.mrf.mxu1 }
0x1209   : > { %v3345_v37 = vadd.f32 %v3340_v35, %v3252_v34 }
0x120a   : > { %v3342_v38 = vpop.f32.mrf.mxu1 }
0x120b   : > { %v3346_v40 = vadd.f32 %v3342_v38, %v3254_v36  ;;  %v3354_v41 = vadd.f32 %v3352_v39, %v3345_v37  ;;  %v3812_v36 = vld [vmem:[#allocation8 + $0xc0] sm:$0xff] }
0x120d   : > { %v3355_v42 = vadd.f32 %v3352_v39, %v3346_v40  ;;  %v3356_v44 = vmax.f32 %v3354_v41, 0.0 }
0x120f   : > { %v3357_v43 = vmax.f32 %v3355_v42, 0.0  ;;  %v3977_v42 = vld [vmem:[#allocation8 + $0xd0] sm:$0xff] }
0x1211   : > { %3400 = vmatprep.subr.mxu0 %v3357_v43 }
0x1212   : > { %3401 = vmatpush1.msra.mxu0 %v3356_v44 }
0x1213   : > { %4483 = vmatmul.mubr.msk.f32.vlgmr.msra.gmra.mxu0 %vm505_vm0, %v3359_v45 }
0x1214   : > { %3609 = vmatprep.mubr.f32.mxu0 %v4883_v0 }
0x12d3   : > { %v3436_v47 = vpop.f32.mrf.mxu0 }
0x12d4   : > { %v3437_v48 = vadd.f32 %v3436_v47, %v3365_v46 }
0x12d5   : > { %v3438_v49 = vpop.f32.mrf.mxu0 }
0x12d6   : > { %v3441_v50 = vadd.f32 %v3437_v48, %v3079_v12  ;;  %v3439_v51 = vadd.f32 %v3438_v49, %v3365_v46 }
0x12d8   : > { %v3442_v52 = vadd.f32 %v3439_v51, %v3081_v14  ;;  %3534 = vrot.lane.b32.xlu1 %v3441_v50, %s4887_s23 }
0x12da   : > { %3536 = vrot.lane.b32.xlu0 %v3442_v52, %s4887_s23  ;;  %3488 = vmatprep.subr.mxu1 %v3442_v52 }
0x12db   : > { %3489 = vmatpush1.msra.mxu1 %v3441_v50 }
0x12dc   : > { %3625 = vrot.lane.b32.xlu1 %v4883_v0, %s4888_s13  ;;  %4484 = vmatmul.mubr.msk.f32.vlgmr.msra.gmra.mxu1 %vm505_vm0, %v3454_v53 }
0x12dd   : > { %3698 = vmatprep.mubr.f32.mxu1 %v4883_v0 }
0x12de   : > { %3623 = vrot.lane.b32.xlu0 %v3442_v52, %s4888_s13 }
0x12e0   : > { %3711 = vperm.xlu1 %4620, %v3708_v54  }
0x12e2   : > { %3621 = vrot.lane.b32.xlu0 %v3441_v50, %s4888_s13 }
0x12e4   : > { %3892 = vrot.lane.b32.xlu1 %v4883_v0, %s4889_s16 }
0x12e6   : > { %3724 = vperm.xlu0 %4619, %v4487_v55  }
0x134a   : > { %v3535_v57 = vpop.permute.xlu1 %3534 }
0x134b   : > { %v3538_v61 = vsel %vm1033_vm3, %v3533_v56, %v3535_v57 }
0x134c   : > { %v3537_v58 = vpop.permute.xlu0 %3536 }
0x134d   : > { %v3539_v59 = vsel %vm1033_vm3, %v3535_v57, %v3537_v58 }
0x134e   : > { %3575 = vmatprep.subr.mxu0 %v3539_v59  ;;  %v3626_v62 = vpop.permute.xlu1 %3625  ;;  %v4079_v59 = vld [vmem:[#allocation11 + $0x40] sm:$0xff] }
0x134f   : > { %3576 = vmatpush1.msra.mxu0 %v3538_v61 }
0x1350   : > { %v3624_v63 = vpop.permute.xlu0 %3623  ;;  %4485 = vmatmul.mubr.msk.f32.vlgmr.msra.gmra.mxu0 %vm505_vm0, %v3452_v60 }
0x1351   : > { %v3628_v1 = vsel %vm1123_vm4, %v3624_v63, %v3626_v62  ;;  %3794 = vmatprep.mubr.f32.mxu0 %v4883_v0 }
0x1352   : > { %3664 = vmatprep.subr.mxu1 %v3628_v1 }
0x1354   : > { %v3622_v2 = vpop.permute.xlu0 %3621 }
0x1355   : > { %v3627_v4 = vsel %vm1123_vm4, %v3622_v2, %v3624_v63 }
0x1356   : > { %3665 = vmatpush1.msra.mxu1 %v3627_v4 }
0x1357   : > { %4486 = vmatmul.mubr.msk.f32.vlgmr.msra.gmra.mxu1 %vm505_vm0, %v3617_v3  ;;  %v4166_v3 = vld [vmem:[#allocation13 + $0x10] sm:$0xff] }
0x1358   : > { %3882 = vmatprep.mubr.f32.mxu1 %v4883_v0 }
0x135b   : > { %v3712_v14 = vpop.permute.xlu1 %3711 }
0x135f   : > { %v3893_v32 = vpop.permute.xlu1 %3892 }
0x1361   : > { %v3725_v21 = vpop.permute.xlu0 %3724 }
0x139c   : > { %v3524_v5 = vpop.f32.mrf.mxu1 }
0x139e   : > { %v3526_v7 = vpop.f32.mrf.mxu1 }
0x1410   : > { %v3611_v6 = vpop.f32.mrf.mxu0 }
0x1411   : > { %v3612_v9 = vadd.f32 %v3611_v6, %v3524_v5 }
0x1412   : > { %v3613_v8 = vpop.f32.mrf.mxu0 }
0x1413   : > { %v3614_v11 = vadd.f32 %v3613_v8, %v3526_v7 }
0x1417   : > { %v3700_v10 = vpop.f32.mrf.mxu1 }
0x1418   : > { %v3705_v12 = vadd.f32 %v3700_v10, %v3612_v9  ;;  %v4275_v9 = vld [vmem:[%s5217_s19] sm:$0xff] (%p5441_p7)  ;;  %v4277_v10 = vld [vmem:[%s5217_s19 + $0x8] sm:$0xff] (%p5441_p7) }
0x1419   : > { %v3702_v13 = vpop.f32.mrf.mxu1 }
0x141a   : > { %v3706_v15 = vadd.f32 %v3702_v13, %v3614_v11  ;;  %v3714_v16 = vadd.f32 %v3712_v14, %v3705_v12  ;;  %v4279_v11 = vld [vmem:[%s5217_s19 + $0x10] sm:$0xff] (%p5441_p7)  ;;  %v4281_v12 = vld [vmem:[%s5217_s19 + $0x18] sm:$0xff] (%p5441_p7) }
0x141c   : > { %v3715_v17 = vadd.f32 %v3712_v14, %v3706_v15  ;;  %v3716_v19 = vmax.f32 %v3714_v16, 0.0 }
0x141e   : > { %v3717_v18 = vmax.f32 %v3715_v17, 0.0 }
0x1420   : > { %3760 = vmatprep.subr.mxu0 %v3717_v18 }
0x1421   : > { %3761 = vmatpush1.msra.mxu0 %v3716_v19 }
0x1422   : > { %4488 = vmatmul.mubr.msk.f32.vlgmr.msra.gmra.mxu0 %vm505_vm0, %v3719_v20 }
0x1423   : > { %3969 = vmatprep.mubr.f32.mxu0 %v4883_v0 }
0x14e2   : > { %v3796_v22 = vpop.f32.mrf.mxu0 }
0x14e3   : > { %v3797_v23 = vadd.f32 %v3796_v22, %v3725_v21 }
0x14e4   : > { %v3798_v24 = vpop.f32.mrf.mxu0 }
0x14e5   : > { %v5359_v25 = vadd.f32 %v3797_v23, %v3441_v50  ;;  %v3799_v26 = vadd.f32 %v3798_v24, %v3725_v21 }
0x14e7   : > { %v3802_v27 = vadd.f32 %v3799_v26, %v3442_v52  ;;  %3894 = vrot.lane.b32.xlu1 %v5359_v25, %s4889_s16 }
0x14e9   : > { %3896 = vrot.lane.b32.xlu0 %v3802_v27, %s4889_s16  ;;  %3848 = vmatprep.subr.mxu1 %v3802_v27  ;;  %s4502_s16 = sshll.u32 (%p5441_p7), %s4964_s20, 4 }
0x14ea   : > { %3849 = vmatpush1.msra.mxu1 %v5359_v25  ;;  %s4262_s15 = scalar_lea.vmem (%p5441_p7), %s5421_s11, %s4502_s16 }
0x14eb   : > { %3985 = vrot.lane.b32.xlu1 %v4883_v0, %s4890_s26  ;;  %4489 = vmatmul.mubr.msk.f32.vlgmr.msra.gmra.mxu1 %vm505_vm0, %v3814_v28  ;;  %4276 = vst [vmem:[%s4262_s15] sm:$0xff] (%p5441_p7), %v4275_v9  ;;  %4278 = vst [vmem:[%s4262_s15 + $0x8] sm:$0xff] (%p5441_p7), %v4277_v10 }
0x14ec   : > { %4058 = vmatprep.mubr.f32.mxu1 %v4883_v0  ;;  %4280 = vst [vmem:[%s4262_s15 + $0x20] sm:$0xff] (%p5441_p7), %v4279_v11  ;;  %4282 = vst [vmem:[%s4262_s15 + $0x28] sm:$0xff] (%p5441_p7), %v4281_v12 }
0x14ed   : > { %3983 = vrot.lane.b32.xlu0 %v3802_v27, %s4890_s26 }
0x14ef   : > { %4071 = vperm.xlu1 %4620, %v4068_v29  }
0x14f1   : > { %3981 = vrot.lane.b32.xlu0 %v5359_v25, %s4890_s26 }
0x14f3   : > { %4173 = vperm.xlu1 %4620, %v4170_v30  }
0x14f5   : > { %4084 = vperm.xlu0 %4619, %v4492_v31  }
0x1559   : > { %v3895_v33 = vpop.permute.xlu1 %3894 }
0x155a   : > { %v3898_v37 = vsel %vm1395_vm5, %v3893_v32, %v3895_v33 }
0x155b   : > { %v3897_v34 = vpop.permute.xlu0 %3896 }
0x155c   : > { %v3899_v35 = vsel %vm1395_vm5, %v3895_v33, %v3897_v34 }
0x155d   : > { %3935 = vmatprep.subr.mxu0 %v3899_v35  ;;  %v3986_v38 = vpop.permute.xlu1 %3985 }
0x155e   : > { %3936 = vmatpush1.msra.mxu0 %v3898_v37 }
0x155f   : > { %v3984_v39 = vpop.permute.xlu0 %3983  ;;  %4490 = vmatmul.mubr.msk.f32.vlgmr.msra.gmra.mxu0 %vm505_vm0, %v3812_v36 }
0x1560   : > { %v3988_v40 = vsel %vm1485_vm6, %v3984_v39, %v3986_v38  ;;  %4154 = vmatprep.mubr.f32.mxu0 %v4883_v0 }
0x1561   : > { %4024 = vmatprep.subr.mxu1 %v3988_v40 }
0x1563   : > { %v3982_v41 = vpop.permute.xlu0 %3981 }
0x1564   : > { %v3987_v43 = vsel %vm1485_vm6, %v3982_v41, %v3984_v39 }
0x1565   : > { %4025 = vmatpush1.msra.mxu1 %v3987_v43 }
0x1566   : > { %4491 = vmatmul.mubr.msk.f32.vlgmr.msra.gmra.mxu1 %vm505_vm0, %v3977_v42 }
0x1567   : > { %4243 = vmatprep.mubr.f32.mxu1 %v4883_v0 }
0x156a   : > { %v4072_v53 = vpop.permute.xlu1 %4071 }
0x156e   : > { %v4174_v4 = vpop.permute.xlu1 %4173 }
0x1570   : > { %v4085_v60 = vpop.permute.xlu0 %4084 }
0x15ab   : > { %v3884_v44 = vpop.f32.mrf.mxu1 }
0x15ad   : > { %v3886_v46 = vpop.f32.mrf.mxu1 }
0x161f   : > { %v3971_v45 = vpop.f32.mrf.mxu0 }
0x1620   : > { %v3972_v48 = vadd.f32 %v3971_v45, %v3884_v44 }
0x1621   : > { %v3973_v47 = vpop.f32.mrf.mxu0 }
0x1622   : > { %v3974_v50 = vadd.f32 %v3973_v47, %v3886_v46 }
0x1626   : > { %v4060_v49 = vpop.f32.mrf.mxu1 }
0x1627   : > { %v4065_v51 = vadd.f32 %v4060_v49, %v3972_v48 }
0x1628   : > { %v4062_v52 = vpop.f32.mrf.mxu1 }
0x1629   : > { %v4066_v54 = vadd.f32 %v4062_v52, %v3974_v50  ;;  %v4074_v55 = vadd.f32 %v4072_v53, %v4065_v51 }
0x162b   : > { %v4075_v56 = vadd.f32 %v4072_v53, %v4066_v54  ;;  %v4076_v58 = vmax.f32 %v4074_v55, 0.0 }
0x162d   : > { %v4077_v57 = vmax.f32 %v4075_v56, 0.0 }
0x162f   : > { %4120 = vmatprep.subr.mxu0 %v4077_v57 }
0x1630   : > { %4121 = vmatpush1.msra.mxu0 %v4076_v58 }
0x1631   : > { %4493 = vmatmul.mubr.msk.f32.vlgmr.msra.gmra.mxu0 %vm505_vm0, %v4079_v59 }
0x16f1   : > { %v4156_v0 = vpop.f32.mrf.mxu0 }
0x16f2   : > { %v4157_v61 = vadd.f32 %v4156_v0, %v4085_v60 }
0x16f3   : > { %v4158_v62 = vpop.f32.mrf.mxu0 }
0x16f4   : > { %v4159_v63 = vadd.f32 %v4158_v62, %v4085_v60  ;;  %v4161_v2 = vadd.f32 %v4157_v61, %v5359_v25 }
0x16f6   : > { %v4162_v1 = vadd.f32 %v4159_v63, %v3802_v27 }
0x16f8   : > { %4209 = vmatprep.subr.mxu1 %v4162_v1 }
0x16f9   : > { %4210 = vmatpush1.msra.mxu1 %v4161_v2 }
0x16fa   : > { %4494 = vmatmul.mubr.msk.f32.vlgmr.msra.gmra.mxu1 %vm505_vm0, %v4166_v3 }
0x17ba   : > { %v4245_v5 = vpop.f32.mrf.mxu1 }
0x17bb   : > { %v4246_v6 = vadd.f32 %v4245_v5, %v4174_v4  ;;  %4259 = sbr.rel (!%p5441_p7) target bundleno = 6088 (0x17c8), region = 100 }
0x17bc   : > { %v4247_v7 = vpop.f32.mrf.mxu1 }
0x17bd   : > { %4495 = vst [vmem:[%s5217_s19 + $0x20] sm:$0xff] %v4246_v6  ;;  %v4248_v8 = vadd.f32 %v4247_v7, %v4174_v4 }
0x17bf   : > { %4496 = vst [vmem:[%s5217_s19 + $0x28] sm:$0xff] %v4248_v8 }
0x17c4   : > { %v4283_v13 = vld [vmem:[%s5217_s19 + $0x20] sm:$0xff] }
0x17c5   : > { %4284 = vst [vmem:[%s4262_s15 + $0x40] sm:$0xff] %v4283_v13 }
0x17c6   : > { %v4285_v14 = vld [vmem:[%s5217_s19 + $0x28] sm:$0xff] }
0x17c7   : > { %4286 = vst [vmem:[%s4262_s15 + $0x48] sm:$0xff] %v4285_v14 }
0x17c8 PF: > { %p23_p1 = scmp.ge.s32.totalorder %s4966_s21, 4   ;;  %s5442_s17 = smov %s4867_s18 }
0x17c9   : > { %s5443_s18 = smov %s4974_s24  ;;  %s5444_s19 = smov %s4966_s21 }
0x17ca   :  { %25 = sbr.rel (!%p23_p1) target bundleno = 8 (0x8), region = 208 }
0x17cf   :  { %4302 = vsyncpa [#allocation4], 1 }
0x17d0   :  { %4304 = vsyncpa [#allocation4 + $0x1], 1 }
0x17d1   :  { %4305 = vsyncpa [#allocation6], 1 }
0x17d2   :  { %4306 = vsyncpa [#allocation9], 1 }
0x17d3   :  { %4307 = vsyncpa [#allocation12], 1 }
0x17d4   :  { %4308 = vsyncpa [#allocation15], 1 }

</bundles_post_ra>
